<compile_context>
chip_gen: v5e
topology: v5e:2x2
jax: 0.10.0
libtpu: 0.0.40
codegen_flags: <defaults>
</compile_context>

<pallas_src>
import functools

import numpy as np
import jax
import jax.numpy as jnp
from jax.experimental import pallas as pl
from jax.experimental.pallas import tpu as pltpu


def _round_up(n, m):
    return ((n + m - 1) // m) * m


def _pad2(a, rows, cols, dtype):
    return jnp.zeros((rows, cols), dtype).at[:a.shape[0], :a.shape[1]].set(a.astype(dtype))


def _text_cnn_kernel(emb_ref, cw_ref, cb_ref, tlim_ref,
                     fc1w_ref, fc1b_ref, fc2w_ref, fc2b_ref,
                     out_ref, patch_ref, *, k_max, word_dim, t_out):
    tb = emb_ref.shape[0]
    d = word_dim
    fnp = cw_ref.shape[1]

    emb = emb_ref[...]                                    # (tb, L_pad, D) bf16

    # --- im2col into VMEM scratch: one lane-dense (tb*T, K_max*D) lhs --------
    for k in range(k_max):                                # static unroll
        patch_ref[:, k * d:(k + 1) * d] = (
            emb[:, k:k + t_out, :].reshape(tb * t_out, d))

    # --- Single MXU matmul (bf16 in, f32 accumulate), bias + ReLU on VPU -----
    conv = jnp.dot(patch_ref[...], cw_ref[...],
                   preferred_element_type=jnp.float32) + cb_ref[...]
    act = jnp.maximum(conv, 0.0).reshape(tb, t_out, fnp)  # (tb, T, FN_pad) f32

    # --- In-kernel validity mask: position t valid iff t <= L - K(channel) ---
    t_idx = jax.lax.broadcasted_iota(jnp.int32, (t_out, fnp), 0)
    mask = (t_idx <= tlim_ref[...]).astype(jnp.float32)   # (T, FN_pad) {0,1}
    act = act * mask[None, :, :]        # zero invalid positions (safe: ReLU>=0)

    # --- Vectorized max-pool over time: pairwise-maximum tree (VPU only) -----
    t = t_out
    while t > 1:
        c = (t + 1) // 2
        act = jnp.maximum(act[:, :c, :], act[:, t - c:t, :])
        t = c
    feat = act.reshape(tb, fnp)                           # (tb, FN_pad) f32

    # --- fc1 -> ReLU -> fc2 (lane-dense, bf16 MXU inputs, f32 accumulate) ----
    h = jnp.dot(feat.astype(jnp.bfloat16), fc1w_ref[...],
                preferred_element_type=jnp.float32) + fc1b_ref[...]
    h = jnp.maximum(h, 0.0)
    out = jnp.dot(h.astype(jnp.bfloat16), fc2w_ref[...],
                  preferred_element_type=jnp.float32) + fc2b_ref[...]
    out_ref[...] = out.astype(out_ref.dtype)


def text_cnn_forward(x_ids, params, *, filters, filter_num):
    B, L = x_ids.shape
    D = params["embedding"].shape[-1]
    k_max = max(filters)
    t_out = L                                    # conv positions computed (masked past L-K)
    l_pad = _round_up(L + k_max - 1, 8)

    sum_fn = sum(filter_num)
    mid = params["fc1_w"].shape[-1]
    out_dim = params["fc2_w"].shape[-1]
    fnp = _round_up(sum_fn, 128)
    midp = _round_up(mid, 128)
    outp = _round_up(out_dim, 128)

    # Batch tiling: pad B; pick tb for MXU row fill, with >=2 grid steps when B
    # is large enough so ("parallel",) can shard across v7x's 2 TensorCores.
    B8 = _round_up(B, 8)
    if B8 <= 32:
        tb = B8
    else:
        tb = min(64, _round_up(B8 // 2, 8))
    B_pad = _round_up(B8, tb)
    grid = (B_pad // tb,)

    # Embedding gather (bf16 table) + batch/time zero-pad; plain-JAX glue.
    # TODO(synk): fuse the gather into the kernel (scalar-prefetch ids + per-row
    # DMA from the HBM-resident table) to remove the emb HBM round-trip.
    emb = params["embedding"].astype(jnp.bfloat16)[x_ids]            # (B, L, D)
    emb = jnp.pad(emb, ((0, B_pad - B), (0, l_pad - L), (0, 0)))     # (B_pad, L_pad, D)

    # Fuse per-filter conv weights/biases into one lane-dense tensor; build the
    # per-channel "last valid conv position" vector (padded lanes -> -1).
    cw = jnp.zeros((k_max * D, fnp), jnp.float32)
    cb = jnp.zeros((1, fnp), jnp.float32)
    tlim_np = np.full((1, fnp), -1, np.int32)
    off = 0
    for i, (K, fn) in enumerate(zip(filters, filter_num)):
        cw = cw.at[:K * D, off:off + fn].set(params[f"conv{i}_w"])
        cb = cb.at[:, off:off + fn].set(params[f"conv{i}_b"])
        tlim_np[0, off:off + fn] = L - K
        off += fn
    cw = cw.astype(jnp.bfloat16)
    tlim = jnp.asarray(tlim_np)

    fc1w = _pad2(params["fc1_w"], fnp, midp, jnp.bfloat16)
    fc1b = _pad2(params["fc1_b"], 1, midp, jnp.float32)
    fc2w = _pad2(params["fc2_w"], midp, outp, jnp.bfloat16)
    fc2b = _pad2(params["fc2_b"], 1, outp, jnp.float32)

    kernel = functools.partial(_text_cnn_kernel, k_max=k_max, word_dim=D, t_out=t_out)
    out_pad = pl.pallas_call(
        kernel,
        out_shape=jax.ShapeDtypeStruct((B_pad, outp), jnp.float32),
        grid=grid,
        in_specs=[
            pl.BlockSpec((tb, l_pad, D), lambda i: (i, 0, 0)),     # emb (pipelined over batch)
            pl.BlockSpec((k_max * D, fnp), lambda i: (0, 0)),      # fused conv W
            pl.BlockSpec((1, fnp), lambda i: (0, 0)),              # fused conv b
            pl.BlockSpec((1, fnp), lambda i: (0, 0)),              # per-channel last valid t
            pl.BlockSpec((fnp, midp), lambda i: (0, 0)),           # fc1 W
            pl.BlockSpec((1, midp), lambda i: (0, 0)),             # fc1 b
            pl.BlockSpec((midp, outp), lambda i: (0, 0)),          # fc2 W
            pl.BlockSpec((1, outp), lambda i: (0, 0)),             # fc2 b
        ],
        out_specs=pl.BlockSpec((tb, outp), lambda i: (i, 0)),
        scratch_shapes=[pltpu.VMEM((tb * t_out, k_max * D), jnp.bfloat16)],
        compiler_params=pltpu.CompilerParams(
            dimension_semantics=("parallel",)),
    )(emb, cw, cb, tlim, fc1w, fc1b, fc2w, fc2b)
    return out_pad[:B, :out_dim]


def reference_forward(x_ids, params, *, filters, filter_num):
    # Pure f32 JAX reference mirroring the PyTorch forward.
    emb = params["embedding"][x_ids].astype(jnp.float32)
    B, L, D = emb.shape
    pooled = []
    for i, K in enumerate(filters):
        T = L - K + 1
        patches = jnp.concatenate([emb[:, k:k + T, :] for k in range(K)], axis=-1)
        conv = patches.reshape(B * T, K * D) @ params[f"conv{i}_w"]
        conv = conv.reshape(B, T, -1) + params[f"conv{i}_b"]
        pooled.append(jnp.max(jnp.maximum(conv, 0.0), axis=1))
    feat = jnp.concatenate(pooled, axis=-1)
    h = jnp.maximum(feat @ params["fc1_w"] + params["fc1_b"], 0.0)
    return h @ params["fc2_w"] + params["fc2_b"]


def init_params(key, *, vocab_size, word_dim, filters, filter_num, mid, out_dim):
    keys = jax.random.split(key, 3 + 2 * len(filters) + 4)
    params = {}
    # wv_matrix-equivalent (embedding weight copied from it in 'static' mode).
    params["embedding"] = 0.1 * jax.random.normal(keys[0], (vocab_size, word_dim), jnp.float32)
    for i, (K, fn) in enumerate(zip(filters, filter_num)):
        # PyTorch Conv2d weight (fn, 1, K, D) -> flattened/transposed (K*D, fn).
        params[f"conv{i}_w"] = 0.1 * jax.random.normal(keys[1 + 2 * i], (K * word_dim, fn), jnp.float32)
        params[f"conv{i}_b"] = 0.1 * jax.random.normal(keys[2 + 2 * i], (1, fn), jnp.float32)
    sum_fn = sum(filter_num)
    params["fc1_w"] = 0.1 * jax.random.normal(keys[-4], (sum_fn, mid), jnp.float32)
    params["fc1_b"] = 0.1 * jax.random.normal(keys[-3], (1, mid), jnp.float32)
    params["fc2_w"] = 0.1 * jax.random.normal(keys[-2], (mid, out_dim), jnp.float32)
    params["fc2_b"] = 0.1 * jax.random.normal(keys[-1], (1, out_dim), jnp.float32)
    return params


if __name__ == "__main__":
    # Small shapes consistent with the module (mode='static', in_channel=1).
    B, L = 2, 16
    vocab_size, word_dim = 50, 32
    filters = (3, 4, 5)
    filter_num = (8, 8, 8)
    mid, out_dim = 64, 10
    # TODO(synk): dropout_prob is a ctor arg but never used in forward(); no-op here.

    key = jax.random.PRNGKey(0)
    k_param, k_x = jax.random.split(key)
    params = init_params(k_param, vocab_size=vocab_size, word_dim=word_dim,
                         filters=filters, filter_num=filter_num,
                         mid=mid, out_dim=out_dim)
    x_ids = jax.random.randint(k_x, (B, L), 0, vocab_size, dtype=jnp.int32)

    fwd = jax.jit(functools.partial(text_cnn_forward,
                                    filters=filters, filter_num=filter_num))
    out = jax.block_until_ready(fwd(x_ids, params))

    ref = reference_forward(x_ids, params, filters=filters, filter_num=filter_num)
    assert out.shape == (B, out_dim)
    # bf16 MXU inputs (f32 accumulation) -> relaxed tolerance vs. the f32 reference.
    assert jnp.allclose(out, ref, atol=3e-2, rtol=3e-2), "mismatch vs JAX reference"

    print("KERNEL_OK")
</pallas_src>

<mosaic_0001>
module attributes {stable_mosaic.version = 11 : i64} {
  func.func @_text_cnn_kernel(%arg0: i32, %arg1: memref<8x24x32xbf16, #tpu.memory_space<vmem>>, %arg2: memref<160x128xbf16, #tpu.memory_space<vmem>>, %arg3: memref<1x128xf32, #tpu.memory_space<vmem>>, %arg4: memref<1x128xi32, #tpu.memory_space<vmem>>, %arg5: memref<128x128xbf16, #tpu.memory_space<vmem>>, %arg6: memref<1x128xf32, #tpu.memory_space<vmem>>, %arg7: memref<128x128xbf16, #tpu.memory_space<vmem>>, %arg8: memref<1x128xf32, #tpu.memory_space<vmem>>, %arg9: memref<8x128xf32, #tpu.memory_space<vmem>>, %arg10: memref<128x160xbf16, #tpu.memory_space<vmem>>) attributes {dimension_semantics = [#tpu.dimension_semantics<parallel>], iteration_bounds = array<i64: 1>, scalar_prefetch = 0 : i64, scratch_operands = 1 : i64, tpu.core_type = #tpu.core_type<tc>, window_params = [{transform_indices = @transform_0, window_bounds = array<i64: 8, 24, 32>}, {pipeline_mode = #tpu.pipeline_mode<synchronous>, transform_indices = @transform_1, window_bounds = array<i64: 160, 128>}, {pipeline_mode = #tpu.pipeline_mode<synchronous>, transform_indices = @transform_2, window_bounds = array<i64: 1, 128>}, {pipeline_mode = #tpu.pipeline_mode<synchronous>, transform_indices = @transform_3, window_bounds = array<i64: 1, 128>}, {pipeline_mode = #tpu.pipeline_mode<synchronous>, transform_indices = @transform_4, window_bounds = array<i64: 128, 128>}, {pipeline_mode = #tpu.pipeline_mode<synchronous>, transform_indices = @transform_5, window_bounds = array<i64: 1, 128>}, {pipeline_mode = #tpu.pipeline_mode<synchronous>, transform_indices = @transform_6, window_bounds = array<i64: 128, 128>}, {pipeline_mode = #tpu.pipeline_mode<synchronous>, transform_indices = @transform_7, window_bounds = array<i64: 1, 128>}, {transform_indices = @transform_8, window_bounds = array<i64: 8, 128>}]} {
    %c0 = arith.constant 0 : index
    %c0_0 = arith.constant 0 : index
    %c0_1 = arith.constant 0 : index
    %0 = vector.load %arg1[%c0, %c0_0, %c0_1] : memref<8x24x32xbf16, #tpu.memory_space<vmem>>, vector<8x24x32xbf16>
    %1 = vector.extract_strided_slice %0 {offsets = [0, 0, 0], sizes = [8, 16, 32], strides = [1, 1, 1]} : vector<8x24x32xbf16> to vector<8x16x32xbf16>
    %2 = vector.shape_cast %1 : vector<8x16x32xbf16> to vector<128x32xbf16>
    %c0_2 = arith.constant 0 : index
    %c0_3 = arith.constant 0 : index
    %3 = vector.load %arg10[%c0_2, %c0_3] : memref<128x160xbf16, #tpu.memory_space<vmem>>, vector<128x32xbf16>
    tpu.vector_store %arg10[%c0_2, %c0_3], %2 {strides = array<i32>} : memref<128x160xbf16, #tpu.memory_space<vmem>>, vector<128x32xbf16>,
    %4 = vector.extract_strided_slice %0 {offsets = [0, 1, 0], sizes = [8, 16, 32], strides = [1, 1, 1]} : vector<8x24x32xbf16> to vector<8x16x32xbf16>
    %5 = vector.shape_cast %4 : vector<8x16x32xbf16> to vector<128x32xbf16>
    %c0_4 = arith.constant 0 : index
    %c32 = arith.constant 32 : index
    %6 = vector.load %arg10[%c0_4, %c32] : memref<128x160xbf16, #tpu.memory_space<vmem>>, vector<128x32xbf16>
    tpu.vector_store %arg10[%c0_4, %c32], %5 {strides = array<i32>} : memref<128x160xbf16, #tpu.memory_space<vmem>>, vector<128x32xbf16>,
    %7 = vector.extract_strided_slice %0 {offsets = [0, 2, 0], sizes = [8, 16, 32], strides = [1, 1, 1]} : vector<8x24x32xbf16> to vector<8x16x32xbf16>
    %8 = vector.shape_cast %7 : vector<8x16x32xbf16> to vector<128x32xbf16>
    %c0_5 = arith.constant 0 : index
    %c64 = arith.constant 64 : index
    %9 = vector.load %arg10[%c0_5, %c64] : memref<128x160xbf16, #tpu.memory_space<vmem>>, vector<128x32xbf16>
    tpu.vector_store %arg10[%c0_5, %c64], %8 {strides = array<i32>} : memref<128x160xbf16, #tpu.memory_space<vmem>>, vector<128x32xbf16>,
    %10 = vector.extract_strided_slice %0 {offsets = [0, 3, 0], sizes = [8, 16, 32], strides = [1, 1, 1]} : vector<8x24x32xbf16> to vector<8x16x32xbf16>
    %11 = vector.shape_cast %10 : vector<8x16x32xbf16> to vector<128x32xbf16>
    %c0_6 = arith.constant 0 : index
    %c96 = arith.constant 96 : index
    %12 = vector.load %arg10[%c0_6, %c96] : memref<128x160xbf16, #tpu.memory_space<vmem>>, vector<128x32xbf16>
    tpu.vector_store %arg10[%c0_6, %c96], %11 {strides = array<i32>} : memref<128x160xbf16, #tpu.memory_space<vmem>>, vector<128x32xbf16>,
    %13 = vector.extract_strided_slice %0 {offsets = [0, 4, 0], sizes = [8, 16, 32], strides = [1, 1, 1]} : vector<8x24x32xbf16> to vector<8x16x32xbf16>
    %14 = vector.shape_cast %13 : vector<8x16x32xbf16> to vector<128x32xbf16>
    %c0_7 = arith.constant 0 : index
    %c128 = arith.constant 128 : index
    %15 = vector.load %arg10[%c0_7, %c128] : memref<128x160xbf16, #tpu.memory_space<vmem>>, vector<128x32xbf16>
    tpu.vector_store %arg10[%c0_7, %c128], %14 {strides = array<i32>} : memref<128x160xbf16, #tpu.memory_space<vmem>>, vector<128x32xbf16>,
    %c0_8 = arith.constant 0 : index
    %c0_9 = arith.constant 0 : index
    %16 = vector.load %arg10[%c0_8, %c0_9] : memref<128x160xbf16, #tpu.memory_space<vmem>>, vector<128x160xbf16>
    %c0_10 = arith.constant 0 : index
    %c0_11 = arith.constant 0 : index
    %17 = vector.load %arg2[%c0_10, %c0_11] : memref<160x128xbf16, #tpu.memory_space<vmem>>, vector<160x128xbf16>
    %cst = arith.constant dense<0.000000e+00> : vector<128x128xf32>
    %18 = tpu.matmul %16, %17, %cst {dimension_numbers = #tpu.dot_dimension_numbers<[1], [0], [0], [1], [0, 0, 1, 1], [], []>} : vector<128x160xbf16>, vector<160x128xbf16>, vector<128x128xf32> -> vector<128x128xf32>
    %c0_12 = arith.constant 0 : index
    %c0_13 = arith.constant 0 : index
    %19 = vector.load %arg3[%c0_12, %c0_13] : memref<1x128xf32, #tpu.memory_space<vmem>>, vector<1x128xf32>
    %20 = vector.broadcast %19 : vector<1x128xf32> to vector<128x128xf32>
    %21 = arith.addf %18, %20 : vector<128x128xf32>
    %cst_14 = arith.constant 0.000000e+00 : f32
    %22 = vector.broadcast %cst_14 : f32 to vector<128x128xf32>
    %23 = arith.maximumf %21, %22 : vector<128x128xf32>
    %24 = vector.shape_cast %23 : vector<128x128xf32> to vector<8x16x128xf32>
    %25 = tpu.iota {dimensions = array<i32: 0>} : vector<16x128xi32>
    %c0_15 = arith.constant 0 : index
    %c0_16 = arith.constant 0 : index
    %26 = vector.load %arg4[%c0_15, %c0_16] : memref<1x128xi32, #tpu.memory_space<vmem>>, vector<1x128xi32>
    %27 = vector.broadcast %26 : vector<1x128xi32> to vector<16x128xi32>
    %28 = arith.cmpi sle, %25, %27 : vector<16x128xi32>
    %29 = arith.extui %28 : vector<16x128xi1> to vector<16x128xi32>
    %30 = arith.sitofp %29 : vector<16x128xi32> to vector<16x128xf32>
    %31 = vector.shape_cast %30 : vector<16x128xf32> to vector<1x16x128xf32>
    %32 = vector.broadcast %31 : vector<1x16x128xf32> to vector<8x16x128xf32>
    %33 = arith.mulf %24, %32 : vector<8x16x128xf32>
    %34 = vector.extract_strided_slice %33 {offsets = [0, 0, 0], sizes = [8, 8, 128], strides = [1, 1, 1]} : vector<8x16x128xf32> to vector<8x8x128xf32>
    %35 = vector.extract_strided_slice %33 {offsets = [0, 8, 0], sizes = [8, 8, 128], strides = [1, 1, 1]} : vector<8x16x128xf32> to vector<8x8x128xf32>
    %36 = arith.maximumf %34, %35 : vector<8x8x128xf32>
    %37 = vector.extract_strided_slice %36 {offsets = [0, 0, 0], sizes = [8, 4, 128], strides = [1, 1, 1]} : vector<8x8x128xf32> to vector<8x4x128xf32>
    %38 = vector.extract_strided_slice %36 {offsets = [0, 4, 0], sizes = [8, 4, 128], strides = [1, 1, 1]} : vector<8x8x128xf32> to vector<8x4x128xf32>
    %39 = arith.maximumf %37, %38 : vector<8x4x128xf32>
    %40 = vector.extract_strided_slice %39 {offsets = [0, 0, 0], sizes = [8, 2, 128], strides = [1, 1, 1]} : vector<8x4x128xf32> to vector<8x2x128xf32>
    %41 = vector.extract_strided_slice %39 {offsets = [0, 2, 0], sizes = [8, 2, 128], strides = [1, 1, 1]} : vector<8x4x128xf32> to vector<8x2x128xf32>
    %42 = arith.maximumf %40, %41 : vector<8x2x128xf32>
    %43 = vector.extract_strided_slice %42 {offsets = [0, 0, 0], sizes = [8, 1, 128], strides = [1, 1, 1]} : vector<8x2x128xf32> to vector<8x1x128xf32>
    %44 = vector.extract_strided_slice %42 {offsets = [0, 1, 0], sizes = [8, 1, 128], strides = [1, 1, 1]} : vector<8x2x128xf32> to vector<8x1x128xf32>
    %45 = arith.maximumf %43, %44 : vector<8x1x128xf32>
    %46 = vector.shape_cast %45 : vector<8x1x128xf32> to vector<8x128xf32>
    %47 = arith.truncf %46 : vector<8x128xf32> to vector<8x128xbf16>
    %c0_17 = arith.constant 0 : index
    %c0_18 = arith.constant 0 : index
    %48 = vector.load %arg5[%c0_17, %c0_18] : memref<128x128xbf16, #tpu.memory_space<vmem>>, vector<128x128xbf16>
    %cst_19 = arith.constant dense<0.000000e+00> : vector<8x128xf32>
    %49 = tpu.matmul %47, %48, %cst_19 {dimension_numbers = #tpu.dot_dimension_numbers<[1], [0], [0], [1], [0, 0, 1, 1], [], []>} : vector<8x128xbf16>, vector<128x128xbf16>, vector<8x128xf32> -> vector<8x128xf32>
    %c0_20 = arith.constant 0 : index
    %c0_21 = arith.constant 0 : index
    %50 = vector.load %arg6[%c0_20, %c0_21] : memref<1x128xf32, #tpu.memory_space<vmem>>, vector<1x128xf32>
    %51 = vector.broadcast %50 : vector<1x128xf32> to vector<8x128xf32>
    %52 = arith.addf %49, %51 : vector<8x128xf32>
    %cst_22 = arith.constant 0.000000e+00 : f32
    %53 = vector.broadcast %cst_22 : f32 to vector<8x128xf32>
    %54 = arith.maximumf %52, %53 : vector<8x128xf32>
    %55 = arith.truncf %54 : vector<8x128xf32> to vector<8x128xbf16>
    %c0_23 = arith.constant 0 : index
    %c0_24 = arith.constant 0 : index
    %56 = vector.load %arg7[%c0_23, %c0_24] : memref<128x128xbf16, #tpu.memory_space<vmem>>, vector<128x128xbf16>
    %cst_25 = arith.constant dense<0.000000e+00> : vector<8x128xf32>
    %57 = tpu.matmul %55, %56, %cst_25 {dimension_numbers = #tpu.dot_dimension_numbers<[1], [0], [0], [1], [0, 0, 1, 1], [], []>} : vector<8x128xbf16>, vector<128x128xbf16>, vector<8x128xf32> -> vector<8x128xf32>
    %c0_26 = arith.constant 0 : index
    %c0_27 = arith.constant 0 : index
    %58 = vector.load %arg8[%c0_26, %c0_27] : memref<1x128xf32, #tpu.memory_space<vmem>>, vector<1x128xf32>
    %59 = vector.broadcast %58 : vector<1x128xf32> to vector<8x128xf32>
    %60 = arith.addf %57, %59 : vector<8x128xf32>
    %c0_28 = arith.constant 0 : index
    %c0_29 = arith.constant 0 : index
    %61 = vector.load %arg9[%c0_28, %c0_29] : memref<8x128xf32, #tpu.memory_space<vmem>>, vector<8x128xf32>
    tpu.vector_store %arg9[%c0_28, %c0_29], %60 {strides = array<i32>} : memref<8x128xf32, #tpu.memory_space<vmem>>, vector<8x128xf32>,
    return
  }
  func.func @transform_0(%arg0: i32) -> (i32, i32, i32) {
    %c0_i32 = arith.constant 0 : i32
    %c0_i32_0 = arith.constant 0 : i32
    %c0_i32_1 = arith.constant 0 : i32
    return %arg0, %c0_i32, %c0_i32_0 : i32, i32, i32
  }
  func.func @transform_1(%arg0: i32) -> (i32, i32) {
    %c0_i32 = arith.constant 0 : i32
    %c0_i32_0 = arith.constant 0 : i32
    %c0_i32_1 = arith.constant 0 : i32
    return %c0_i32, %c0_i32_0 : i32, i32
  }
  func.func @transform_2(%arg0: i32) -> (i32, i32) {
    %c0_i32 = arith.constant 0 : i32
    %c0_i32_0 = arith.constant 0 : i32
    %c0_i32_1 = arith.constant 0 : i32
    return %c0_i32, %c0_i32_0 : i32, i32
  }
  func.func @transform_3(%arg0: i32) -> (i32, i32) {
    %c0_i32 = arith.constant 0 : i32
    %c0_i32_0 = arith.constant 0 : i32
    %c0_i32_1 = arith.constant 0 : i32
    return %c0_i32, %c0_i32_0 : i32, i32
  }
  func.func @transform_4(%arg0: i32) -> (i32, i32) {
    %c0_i32 = arith.constant 0 : i32
    %c0_i32_0 = arith.constant 0 : i32
    %c0_i32_1 = arith.constant 0 : i32
    return %c0_i32, %c0_i32_0 : i32, i32
  }
  func.func @transform_5(%arg0: i32) -> (i32, i32) {
    %c0_i32 = arith.constant 0 : i32
    %c0_i32_0 = arith.constant 0 : i32
    %c0_i32_1 = arith.constant 0 : i32
    return %c0_i32, %c0_i32_0 : i32, i32
  }
  func.func @transform_6(%arg0: i32) -> (i32, i32) {
    %c0_i32 = arith.constant 0 : i32
    %c0_i32_0 = arith.constant 0 : i32
    %c0_i32_1 = arith.constant 0 : i32
    return %c0_i32, %c0_i32_0 : i32, i32
  }
  func.func @transform_7(%arg0: i32) -> (i32, i32) {
    %c0_i32 = arith.constant 0 : i32
    %c0_i32_0 = arith.constant 0 : i32
    %c0_i32_1 = arith.constant 0 : i32
    return %c0_i32, %c0_i32_0 : i32, i32
  }
  func.func @transform_8(%arg0: i32) -> (i32, i32) {
    %c0_i32 = arith.constant 0 : i32
    %c0_i32_0 = arith.constant 0 : i32
    return %arg0, %c0_i32 : i32, i32
  }
}

</mosaic_0001>

<bundles_post_ra>
// kernel: text_cnn_forward.1
= control target key start
LH: loop header
LB: loop body
LE: loop exit
PB: predicated region body
PF: predicated region fallthrough
CT: control target
= control target key end

     0   :  { %vm54_vm0 = vcmask 257024   ;;  %vm71_vm1 = vsmask.f32 3328  ;;  %vm72_vm2 = vsmask.f32 7440  ;;  %vm667_vm3 = vcmask 1041408   ;;  %s2483_s0 = inlined_call_operand.vmem [shape: bf16[8,24,32], index: 0, kind: input, shape index: {}]   ;;  %s2484_s1 = inlined_call_operand.vmem [shape: bf16[160,128], index: 1, kind: input, shape index: {}]   ;;  %s2485_s2 = inlined_call_operand.vmem [shape: f32[1,128], index: 2, kind: input, shape index: {}]   ;;  %s2486_s3 = inlined_call_operand.vmem [shape: s32[1,128], index: 3, kind: input, shape index: {}]   ;;  %s2487_s5 = inlined_call_operand.vmem [shape: f32[1,128], index: 5, kind: input, shape index: {}]   ;;  %s2488_s4 = inlined_call_operand.vmem [shape: bf16[128,128], index: 4, kind: input, shape index: {}]   ;;  %s2489_s6 = inlined_call_operand.vmem [shape: bf16[128,128], index: 6, kind: input, shape index: {}]   ;;  %s2490_s7 = inlined_call_operand.vmem [shape: f32[1,128], index: 7, kind: input, shape index: {}]   ;;  %s2491_s8 = inlined_call_operand.vmem [shape: f32[8,128], index: 8, kind: output, shape index: {}]  }
   0x1   :  { %v1722_v0 = vld [vmem:[%s2483_s0] sm:$0xf]  ;;  %v1727_v1 = vld [vmem:[%s2483_s0 + $0x4] sm:$0xf]  ;;  %vm668_vm4 = vcmask 1045508   ;;  %vm355_vm6 = vcmask 1042432   ;;  %vm1779_vm9 = vmor %vm71_vm1, %vm72_vm2 }
   0x2   :  { %v75_v2 = vshrl.u32 %v1722_v0, 16  ;;  %v78_v3 = vshll.u32 %v1722_v0, 16  ;;  %v84_v4 = vshll.u32 %v1727_v1, 16  ;;  %vm1732_vm5 = vmor %vm667_vm3, %vm668_vm4  ;;  %v1424_v6 = vrot.slane %v1722_v0, 10  ;;  %55 = vst.msk [vmem:[#allocation2] sm:$0xf] %vm54_vm0, %v1722_v0 }
   0x3   :  { %v672_v7 = vrot.slane %v1727_v1, 6  ;;  %56 = vst.msk [vmem:[#allocation2 + $0x8] sm:$0xf] %vm54_vm0, %v1727_v1  ;;  %vm356_vm7 = vcmask 1046532   ;;  %v1416_v8 = vrot.slane %v1722_v0, 9  ;;  %v360_v13 = vrot.slane %v1727_v1, 5 }
   0x4   :  { %v77_v9 = vrot.slane %v75_v2, 4  ;;  %v80_v10 = vrot.slane %v78_v3, 5  ;;  %v86_v11 = vrot.slane %v84_v4, 5  ;;  %vm1749_vm8 = vmor %vm355_vm6, %vm356_vm7  ;;  %v1759_v16 = vld [vmem:[%s2483_s0 + $0x8] sm:$0xf]  ;;  %v88_v17 = vshrl.u32 %v1727_v1, 16 }
   0x5   :  { %v673_v14 = vsel %vm1732_vm5, %v1424_v6, %v672_v7  ;;  %v674_v15 = vrot.slane %v672_v7, 4  ;;  %v1765_v18 = vld [vmem:[%s2483_s0 + $0xc] sm:$0xf]  ;;  %v361_v20 = vsel %vm1749_vm8, %v1416_v8, %v360_v13  ;;  %v94_v21 = vshll.u32 %v1759_v16, 16  ;;  %v1775_v23 = vld [vmem:[%s2483_s0 + $0x10] sm:$0xf] }
   0x6   :  { %v81_v19 = vor.u32 %v80_v10, %v77_v9  ;;  %742 = vst.msk [vmem:[#allocation2 + $0x4] sm:$0xf] %vm54_vm0, %v673_v14  ;;  %v675_v22 = vrot.slane %v1759_v16, 6  ;;  %s1670_s15 = smov 64   ;;  %v90_v25 = vrot.slane %v88_v17, 4  ;;  %v362_v26 = vrot.slane %v360_v13, 4 }
   0x7   :  { %414 = vrot.lane.b32.xlu1 %v361_v20, %s1670_s15  ;;  %v363_v27 = vrot.slane %v1759_v16, 5  ;;  %v99_v28 = vshrl.u32 %v1765_v18, 16  ;;  %57 = vst.msk [vmem:[#allocation2 + $0x10] sm:$0xf] %vm54_vm0, %v1765_v18  ;;  %v96_v30 = vrot.slane %v94_v21, 5  ;;  %v102_v32 = vshll.u32 %v1765_v18, 16 }
   0x8   :  { %v82_v29 = vrot.slane %v81_v19, 4  ;;  %v676_v31 = vsel %vm1732_vm5, %v674_v15, %v675_v22  ;;  %58 = vst.msk [vmem:[#allocation2 + $0x18] sm:$0xf] %vm54_vm0, %v1775_v23  ;;  %v91_v33 = vor.u32 %v90_v25, %v86_v11  ;;  %v108_v35 = vshll.u32 %v1775_v23, 16  ;;  %v1800_v36 = vld [vmem:[%s2483_s0 + $0x14] sm:$0xf] }
   0x9   :  { %743 = vst.msk [vmem:[#allocation2 + $0xc] sm:$0xf] %vm54_vm0, %v676_v31  ;;  %v101_v34 = vrot.slane %v99_v28, 4  ;;  %v104_v38 = vrot.slane %v102_v32, 5  ;;  %v1425_v39 = vrot.slane %v1765_v18, 10  ;;  %v679_v40 = vrot.slane %v1775_v23, 6 }
   0xa   :  { %v87_v37 = vsel %vm1779_vm9, %v82_v29, %v86_v11  ;;  %s1671_s18 = smov 32   ;;  %v92_v41 = vrot.slane %v91_v33, 4  ;;  %v364_v42 = vsel %vm1749_vm8, %v362_v26, %v363_v27  ;;  %v1809_v43 = vrot.slane %v108_v35, 5  ;;  %v1815_v45 = vld [vmem:[%s2483_s0 + $0x3c] sm:$0xf]  ;;  %s1672_s29 = smov 96  }
   0xb   :  { %266 = vrot.lane.b32.xlu0 %v87_v37, %s1671_s18  ;;  %v112_v44 = vshrl.u32 %v1775_v23, 16  ;;  %v680_v46 = vsel %vm1732_vm5, %v1425_v39, %v679_v40  ;;  %v681_v47 = vrot.slane %v679_v40, 4  ;;  %v118_v48 = vshll.u32 %v1800_v36, 16  ;;  %65 = vst.msk [vmem:[#allocation2 + $0x50] sm:$0xf] %vm54_vm0, %v1815_v45 }
   0xc   :  { %v682_v49 = vrot.slane %v1800_v36, 6  ;;  %v105_v50 = vor.u32 %v104_v38, %v101_v34  ;;  %744 = vst.msk [vmem:[#allocation2 + $0x14] sm:$0xf] %vm54_vm0, %v680_v46  ;;  %v1827_v52 = vld [vmem:[%s2483_s0 + $0x40] sm:$0xf]  ;;  %v97_v54 = vsel %vm1779_vm9, %v92_v41, %v96_v30  ;;  %v497_v56 = vrot.slane %v99_v28, 5 }
   0xd   :  { %v114_v51 = vrot.slane %v112_v44, 4  ;;  %66 = vst.msk [vmem:[#allocation2 + $0x58] sm:$0xf] %vm54_vm0, %v1827_v52  ;;  %v120_v57 = vrot.slane %v118_v48, 5  ;;  %vm479_vm10 = vsmask.f32 2304 }
   0xe   :  { %v683_v53 = vsel %vm1732_vm5, %v681_v47, %v682_v49  ;;  %vm480_vm11 = vsmask.f32 6416  ;;  %v498_v58 = vrot.slane %v102_v32, 6  ;;  %v106_v59 = vrot.slane %v105_v50, 4  ;;  %v1847_v63 = vld [vmem:[%s2483_s0 + $0x18] sm:$0xf] }
   0xf   :  { %416 = vrot.lane.b32.xlu1 %v364_v42, %s1670_s15  ;;  %v115_v55 = vor.u32 %v114_v51, %v1809_v43  ;;  %745 = vst.msk [vmem:[#allocation2 + $0x1c] sm:$0xf] %vm54_vm0, %v683_v53  ;;  %v482_v61 = vrot.slane %v75_v2, 5  ;;  %v483_v62 = vrot.slane %v78_v3, 6  ;;  %v486_v6 = vrot.slane %v88_v17, 5  ;;  %vm1865_vm12 = vmor %vm479_vm10, %vm480_vm11 }
  0x10   :  { %v487_v7 = vrot.slane %v84_v4, 6  ;;  %v1854_v8 = vld [vmem:[%s2483_s0 + $0x1c] sm:$0xf]  ;;  %59 = vst.msk [vmem:[#allocation2 + $0x20] sm:$0xf] %vm54_vm0, %v1847_v63  ;;  %v499_v0 = vor.u32 %v498_v58, %v497_v56  ;;  %v501_v2 = vrot.slane %v112_v44, 5  ;;  %v111_v19 = vsel %vm1779_vm9, %v106_v59, %v1809_v43 }
  0x11   :  { %v116_v60 = vrot.slane %v115_v55, 4  ;;  %v502_v3 = vrot.slane %v108_v35, 6  ;;  %v484_v9 = vor.u32 %v483_v62, %v482_v61  ;;  %60 = vst.msk [vmem:[#allocation2 + $0x28] sm:$0xf] %vm54_vm0, %v1854_v8  ;;  %v204_v11 = vshll.u32 %v1827_v52, 16 }
  0x12   :  { %v488_v10 = vor.u32 %v487_v7, %v486_v6  ;;  %v1429_v13 = vrot.slane %v1815_v45, 10  ;;  %v367_v14 = vrot.slane %v1775_v23, 5  ;;  %v707_v17 = vrot.slane %v1827_v52, 6  ;;  %v1889_v30 = vld [vmem:[%s2483_s0 + $0x44] sm:$0xf] }
  0x13   :  { %268 = vrot.lane.b32.xlu0 %v97_v54, %s1671_s18  ;;  %v121_v1 = vsel %vm1779_vm9, %v116_v60, %v120_v57  ;;  %v485_v15 = vrot.slane %v484_v9, 4  ;;  %v195_v20 = vshrl.u32 %v1815_v45, 16  ;;  %v198_v22 = vshll.u32 %v1815_v45, 16  ;;  %v1924_v59 = vld [vmem:[%s2483_s0 + $0x20] sm:$0xf] }
  0x14   :  { %v208_v25 = vshrl.u32 %v1827_v52, 16  ;;  %v1880_v26 = vor.u32 %v502_v3, %v501_v2  ;;  %v708_v28 = vsel %vm1732_vm5, %v1429_v13, %v707_v17  ;;  %v709_v29 = vrot.slane %v707_v17, 4  ;;  %v1931_v62 = vld [vmem:[%s2483_s0 + $0x48] sm:$0xf] }
  0x15   :  { %v489_v27 = vsel %vm1865_vm12, %v485_v15, %v488_v10  ;;  %v500_v31 = vrot.slane %v499_v0, 4  ;;  %v1892_v32 = vrot.slane %v204_v11, 5  ;;  %752 = vst.msk [vmem:[#allocation2 + $0x54] sm:$0xf] %vm54_vm0, %v708_v28  ;;  %v710_v34 = vrot.slane %v1889_v30, 6 }
  0x16   :  { %602 = vrot.lane.b32.xlu2 %v489_v27, %s1672_s29  ;;  %v210_v33 = vrot.slane %v208_v25, 4  ;;  %v491_v35 = vshrl.u32 %v1759_v16, 16  ;;  %v494_v37 = vrot.slane %v94_v21, 6  ;;  %v197_v38 = vrot.slane %v195_v20, 4  ;;  %67 = vst.msk [vmem:[#allocation2 + $0x60] sm:$0xf] %vm54_vm0, %v1931_v62 }
  0x17   :  { %272 = vrot.lane.b32.xlu1 %v121_v1, %s1671_s18  ;;  %v200_v39 = vrot.slane %v198_v22, 5  ;;  %v711_v40 = vsel %vm1732_vm5, %v709_v29, %v710_v34  ;;  %v369_v41 = vrot.slane %v367_v14, 4  ;;  %v370_v42 = vrot.slane %v1800_v36, 5  ;;  %v1943_v1 = vld [vmem:[%s2483_s0 + $0x4c] sm:$0xf] }
  0x18   :  { %753 = vst.msk [vmem:[#allocation2 + $0x5c] sm:$0xf] %vm54_vm0, %v711_v40  ;;  %v490_v43 = vrot.slane %v488_v10, 4  ;;  %v493_v44 = vrot.slane %v491_v35, 5  ;;  %v504_v16 = vsel %vm1865_vm12, %v500_v31, %v1880_v26  ;;  %v211_v21 = vor.u32 %v210_v33, %v1892_v32 }
  0x19   :  { %v214_v46 = vshll.u32 %v1889_v30, 16  ;;  %v201_v49 = vor.u32 %v200_v39, %v197_v38  ;;  %v371_v50 = vsel %vm1749_vm8, %v369_v41, %v370_v42  ;;  %v557_v53 = vrot.slane %v195_v20, 5  ;;  %68 = vst.msk [vmem:[#allocation2 + $0x68] sm:$0xf] %vm54_vm0, %v1943_v1  ;;  %v1980_v38 = vld [vmem:[%s2483_s0 + $0x50] sm:$0xf] }
  0x1a   :  { %v495_v47 = vor.u32 %v494_v37, %v493_v44  ;;  %v558_v54 = vrot.slane %v198_v22, 6  ;;  %v212_v55 = vrot.slane %v211_v21, 4  ;;  %v1426_v57 = vrot.slane %v1847_v63, 10 }
  0x1b   :  { %270 = vrot.lane.b32.xlu0 %v111_v19, %s1671_s18  ;;  %v216_v56 = vrot.slane %v214_v46, 5  ;;  %v686_v58 = vrot.slane %v1854_v8, 6  ;;  %v1417_v60 = vrot.slane %v1765_v18, 9  ;;  %v689_v61 = vrot.slane %v1924_v59, 6 }
  0x1c   :  { %v496_v51 = vsel %vm1865_vm12, %v490_v43, %v495_v47  ;;  %v202_v6 = vrot.slane %v201_v49, 4  ;;  %v561_v7 = vrot.slane %v208_v25, 5  ;;  %v559_v3 = vor.u32 %v558_v54, %v557_v53 }
  0x1d   :  { %v687_v0 = vsel %vm1732_vm5, %v1426_v57, %v686_v58  ;;  %v688_v2 = vrot.slane %v686_v58, 4  ;;  %v562_v18 = vrot.slane %v204_v11, 6  ;;  %v506_v9 = vshrl.u32 %v1800_v36, 16  ;;  %v2012_v57 = vld [vmem:[%s2483_s0 + $0x28] sm:$0xf] }
  0x1e   :  { %604 = vrot.lane.b32.xlu2 %v496_v51, %s1672_s29  ;;  %746 = vst.msk [vmem:[#allocation2 + $0x24] sm:$0xf] %vm54_vm0, %v687_v0  ;;  %v217_v10 = vsel %vm1779_vm9, %v212_v55, %v216_v56  ;;  %v132_v13 = vshll.u32 %v1854_v8, 16  ;;  %v136_v15 = vshrl.u32 %v1854_v8, 16  ;;  %v368_v11 = vsel %vm1749_vm8, %v1417_v60, %v367_v14  ;;  %v2007_v56 = vld [vmem:[%s2483_s0 + $0x24] sm:$0xf] }
  0x1f   :  { %606 = vrot.lane.b32.xlu1 %v504_v16, %s1672_s29  ;;  %v690_v17 = vsel %vm1732_vm5, %v688_v2, %v689_v61  ;;  %v508_v19 = vrot.slane %v506_v9, 5  ;;  %v509_v20 = vrot.slane %v118_v48, 6  ;;  %v207_v22 = vsel %vm1779_vm9, %v202_v6, %v1892_v32  ;;  %61 = vst.msk [vmem:[#allocation2 + $0x30] sm:$0xf] %vm54_vm0, %v2007_v56  ;;  %v1476_v4 = vld [vmem:[#allocation2 + $0x58] sm:$0xf0] }
  0x20   :  { %747 = vst.msk [vmem:[#allocation2 + $0x2c] sm:$0xf] %vm54_vm0, %v690_v17  ;;  %v395_v25 = vrot.slane %v1827_v52, 5  ;;  %v123_v27 = vshrl.u32 %v1847_v63, 16  ;;  %v126_v23 = vshll.u32 %v1847_v63, 16  ;;  %v560_v28 = vrot.slane %v559_v3, 4 }
  0x21   :  { %v1967_v14 = vor.u32 %v562_v18, %v561_v7  ;;  %v1970_v29 = vrot.slane %v132_v13, 5  ;;  %v138_v36 = vrot.slane %v136_v15, 4  ;;  %v505_v48 = vrot.slane %v1880_v26, 4  ;;  %62 = vst.msk [vmem:[#allocation2 + $0x38] sm:$0xf] %vm54_vm0, %v2012_v57 }
  0x22   :  { %v510_v31 = vor.u32 %v509_v20, %v508_v19  ;;  %v398_v32 = vrot.slane %v1889_v30, 5  ;;  %v1430_v33 = vrot.slane %v1931_v62, 10  ;;  %v397_v52 = vrot.slane %v395_v25, 4 }
  0x23   :  { %420 = vrot.lane.b32.xlu0 %v371_v50, %s1670_s15  ;;  %v125_v34 = vrot.slane %v123_v27, 4  ;;  %v128_v35 = vrot.slane %v126_v23, 5  ;;  %v714_v37 = vrot.slane %v1943_v1, 6  ;;  %v564_v26 = vsel %vm1865_vm12, %v560_v28, %v1967_v14 }
  0x24   :  { %v139_v39 = vor.u32 %v138_v36, %v1970_v29  ;;  %v142_v40 = vshll.u32 %v1924_v59, 16  ;;  %v717_v41 = vrot.slane %v1980_v38, 6  ;;  %v511_v42 = vsel %vm1865_vm12, %v505_v48, %v510_v31 }
  0x25   :  { %v715_v43 = vsel %vm1732_vm5, %v1430_v33, %v714_v37  ;;  %v716_v44 = vrot.slane %v714_v37, 4  ;;  %v129_v16 = vor.u32 %v128_v35, %v125_v34  ;;  %v512_v21 = vrot.slane %v123_v27, 5 }
  0x26   :  { %418 = vrot.lane.b32.xlu2 %v368_v11, %s1670_s15  ;;  %754 = vst.msk [vmem:[#allocation2 + $0x64] sm:$0xf] %vm54_vm0, %v715_v43  ;;  %v513_v47 = vrot.slane %v126_v23, 6  ;;  %v399_v50 = vsel %vm1749_vm8, %v397_v52, %v398_v32  ;;  %v140_v51 = vrot.slane %v139_v39, 4  ;;  %v144_v53 = vrot.slane %v142_v40, 5 }
  0x27   :  { %288 = vrot.lane.b32.xlu1 %v217_v10, %s1671_s18  ;;  %v718_v49 = vsel %vm1732_vm5, %v716_v44, %v717_v41  ;;  %v1421_v54 = vrot.slane %v1815_v45, 9  ;;  %v566_v55 = vshrl.u32 %v1889_v30, 16  ;;  %v130_v45 = vrot.slane %v129_v16, 4 }
  0x28   :  { %755 = vst.msk [vmem:[#allocation2 + $0x6c] sm:$0xf] %vm54_vm0, %v718_v49  ;;  %v514_v58 = vor.u32 %v513_v47, %v512_v21  ;;  %v516_v60 = vrot.slane %v136_v15, 5  ;;  %v517_v61 = vrot.slane %v132_v13, 6  ;;  %v145_v6 = vsel %vm1779_vm9, %v140_v51, %v144_v53  ;;  %v2078_v51 = vld [vmem:[%s2483_s0 + $0x54] sm:$0xf] }
  0x29   :  { %v396_v7 = vsel %vm1749_vm8, %v1421_v54, %v395_v25  ;;  %v228_v0 = vshll.u32 %v1943_v1, 16  ;;  %v232_v2 = vshrl.u32 %v1943_v1, 16  ;;  %v568_v3 = vrot.slane %v566_v55, 5  ;;  %v1610_v55 = vld [vmem:[#allocation2 + $0x4] sm:$0xf] }
  0x2a   :  { %v569_v18 = vrot.slane %v214_v46, 6  ;;  %v1427_v9 = vrot.slane %v2007_v56, 10  ;;  %v693_v10 = vrot.slane %v2012_v57, 6  ;;  %v219_v13 = vshrl.u32 %v1931_v62, 16  ;;  %69 = vst.msk [vmem:[#allocation2 + $0x70] sm:$0xf] %vm54_vm0, %v2078_v51 }
  0x2b   :  { %286 = vrot.lane.b32.xlu0 %v207_v22, %s1671_s18  ;;  %v222_v15 = vshll.u32 %v1931_v62, 16  ;;  %v135_v17 = vsel %vm1779_vm9, %v130_v45, %v1970_v29  ;;  %v374_v11 = vrot.slane %v1854_v8, 5  ;;  %v515_v46 = vrot.slane %v514_v58, 4  ;;  %v2048_v8 = vld [vmem:[%s2483_s0 + $0x2c] sm:$0xf] }
  0x2c   :  { %v694_v30 = vsel %vm1732_vm5, %v1427_v9, %v693_v10  ;;  %v2038_v19 = vor.u32 %v517_v61, %v516_v60  ;;  %v2041_v20 = vrot.slane %v228_v0, 5  ;;  %v234_v22 = vrot.slane %v232_v2, 4  ;;  %v1436_v45 = vld [vmem:[#allocation2 + $0x8] sm:$0xf0] }
  0x2d   :  { %748 = vst.msk [vmem:[#allocation2 + $0x34] sm:$0xf] %vm54_vm0, %v694_v30  ;;  %v565_v25 = vrot.slane %v1967_v14, 4  ;;  %v570_v27 = vor.u32 %v569_v18, %v568_v3  ;;  %v695_v23 = vrot.slane %v693_v10, 4  ;;  %v221_v28 = vrot.slane %v219_v13, 4  ;;  %v1635_v14 = vld [vmem:[%s2484_s1 + $0x48] sm:$0xff] }
  0x2e   :  { %608 = vrot.lane.b32.xlu2 %v511_v42, %s1672_s29  ;;  %v224_v29 = vrot.slane %v222_v15, 5  ;;  %v376_v36 = vrot.slane %v374_v11, 4  ;;  %v377_v48 = vrot.slane %v1924_v59, 5  ;;  %v696_v31 = vrot.slane %v2048_v8, 6  ;;  %1010 = vmatpush.bf16.msra.mxu1 %v1635_v14 }
  0x2f   :  { %622 = vrot.lane.b32.xlu1 %v564_v26, %s1672_s29  ;;  %v519_v32 = vsel %vm1865_vm12, %v515_v46, %v2038_v19  ;;  %v235_v33 = vor.u32 %v234_v22, %v2041_v20  ;;  %v238_v52 = vshll.u32 %v1980_v38, 16  ;;  %v571_v34 = vsel %vm1865_vm12, %v565_v25, %v570_v27  ;;  %1660 = vmatpush.bf16.msra.mxu3 %v1635_v14 }
  0x30   :  { %v697_v35 = vsel %vm1732_vm5, %v695_v23, %v696_v31  ;;  %v225_v37 = vor.u32 %v224_v29, %v221_v28  ;;  %v378_v26 = vsel %vm1749_vm8, %v376_v36, %v377_v48  ;;  %v572_v39 = vrot.slane %v219_v13, 5 }
  0x31   :  { %749 = vst.msk [vmem:[#allocation2 + $0x3c] sm:$0xf] %vm54_vm0, %v697_v35  ;;  %v573_v41 = vrot.slane %v222_v15, 6  ;;  %v236_v42 = vrot.slane %v235_v33, 4  ;;  %v240_v43 = vrot.slane %v238_v52, 5  ;;  %v1418_v44 = vrot.slane %v1847_v63, 9 }
  0x32   :  { %v521_v16 = vshrl.u32 %v1924_v59, 16  ;;  %v226_v21 = vrot.slane %v225_v37, 4  ;;  %v576_v47 = vrot.slane %v232_v2, 5  ;;  %v577_v49 = vrot.slane %v228_v0, 6  ;;  %v1634_v63 = vld [vmem:[%s2484_s1 + $0x40] sm:$0xff] }
  0x33   :  { %436 = vrot.lane.b32.xlu0 %v399_v50, %s1670_s15  ;;  %v156_v50 = vshll.u32 %v2012_v57, 16  ;;  %v574_v53 = vor.u32 %v573_v41, %v572_v39  ;;  %v160_v54 = vshrl.u32 %v2012_v57, 16  ;;  %v241_v58 = vsel %vm1779_vm9, %v236_v42, %v240_v43  ;;  %1011 = vmatpush.bf16.msra.mxu1 %v1634_v63 }
  0x34   :  { %v375_v60 = vsel %vm1749_vm8, %v1418_v44, %v374_v11  ;;  %v523_v61 = vrot.slane %v521_v16, 5  ;;  %v524_v0 = vrot.slane %v142_v40, 6  ;;  %vm930_vm13 = vcmask 261120   ;;  %1661 = vmatpush.bf16.msra.mxu3 %v1634_v63  ;;  %v2154_v16 = vld [vmem:[%s2483_s0 + $0x30] sm:$0xf] }
  0x35   :  { %v1431_v2 = vrot.slane %v2078_v51, 10  ;;  %v147_v18 = vshrl.u32 %v2007_v56, 16  ;;  %v150_v9 = vshll.u32 %v2007_v56, 16  ;;  %v2107_v59 = vrot.slane %v156_v50, 5  ;;  %63 = vst.msk [vmem:[#allocation2 + $0x40] sm:$0xf] %vm54_vm0, %v2154_v16 }
  0x36   :  { %434 = vrot.lane.b32.xlu2 %v396_v7, %s1670_s15  ;;  %v2092_v7 = vld [vmem:[%s2483_s0 + $0x58] sm:$0xf]  ;;  %v162_v40 = vrot.slane %v160_v54, 4  ;;  %v231_v13 = vsel %vm1779_vm9, %v226_v21, %v2041_v20  ;;  %v402_v15 = vrot.slane %v1943_v1, 5  ;;  %v2115_v11 = vor.u32 %v577_v49, %v576_v47  ;;  %v2124_v20 = vld [vmem:[%s2483_s0 + $0x5c] sm:$0xf] }
  0x37   :  { %276 = vrot.lane.b32.xlu1 %v145_v6, %s1671_s18  ;;  %v1439_v6 = vor.u32 %v1610_v55, %v1436_v45  ;;  %v721_v3 = vrot.slane %v2092_v7, 6  ;;  %70 = vst.msk [vmem:[#allocation2 + $0x78] sm:$0xf] %vm54_vm0, %v2092_v7  ;;  %v520_v30 = vrot.slane %v2038_v19, 4  ;;  %v525_v46 = vor.u32 %v524_v0, %v523_v61  ;;  %v1633_v19 = vld [vmem:[%s2484_s1 + $0x38] sm:$0xff] }
  0x38   :  { %v149_v25 = vrot.slane %v147_v18, 4  ;;  %v152_v27 = vrot.slane %v150_v9, 5  ;;  %v163_v1 = vor.u32 %v162_v40, %v2107_v59  ;;  %v166_v23 = vshll.u32 %v2048_v8, 16  ;;  %955 = vmatpush.bf16.msra.mxu0 %v1633_v19  ;;  %1652 = vmatpush.bf16.msra.mxu2 %v1633_v19  ;;  %v1612_v49 = vld [vmem:[#allocation2 + $0x14] sm:$0xf] }
  0x39   :  { %v722_v10 = vsel %vm1732_vm5, %v1431_v2, %v721_v3  ;;  %1536 = vmatmul.msk.bf16.vlgmr.msra.gmra.mxu1 %vm930_vm13, %v1439_v6  ;;  %v723_v22 = vrot.slane %v721_v3, 4  ;;  %v724_v28 = vrot.slane %v2124_v20, 6  ;;  %v404_v29 = vrot.slane %v402_v15, 4 }
  0x3a   :  { %756 = vst.msk [vmem:[#allocation2 + $0x74] sm:$0xf] %vm54_vm0, %v722_v10  ;;  %v405_v36 = vrot.slane %v1980_v38, 5  ;;  %v526_v31 = vsel %vm1865_vm12, %v520_v30, %v525_v46  ;;  %v164_v33 = vrot.slane %v163_v1, 4  ;;  %v527_v37 = vrot.slane %v147_v18, 5 }
  0x3b   :  { %274 = vrot.lane.b32.xlu0 %v135_v17, %s1671_s18  ;;  %v575_v17 = vrot.slane %v574_v53, 4  ;;  %v725_v14 = vsel %vm1732_vm5, %v723_v22, %v724_v28  ;;  %v581_v39 = vshrl.u32 %v1980_v38, 16  ;;  %v1422_v41 = vrot.slane %v1931_v62, 9  ;;  %v1632_v62 = vld [vmem:[%s2484_s1 + $0x30] sm:$0xff]  ;;  %v1444_v53 = vld [vmem:[#allocation2 + $0x18] sm:$0xf0] }
  0x3c   :  { %757 = vst.msk [vmem:[#allocation2 + $0x7c] sm:$0xf] %vm54_vm0, %v725_v14  ;;  %v406_v35 = vsel %vm1749_vm8, %v404_v29, %v405_v36  ;;  %v531_v43 = vrot.slane %v160_v54, 5  ;;  %v252_v44 = vshll.u32 %v2092_v7, 16  ;;  %v256_v47 = vshrl.u32 %v2092_v7, 16  ;;  %956 = vmatpush.bf16.msra.mxu0 %v1632_v62  ;;  %1653 = vmatpush.bf16.msra.mxu2 %v1632_v62  ;;  %v1630_v36 = vld [vmem:[%s2484_s1 + $0x20] sm:$0xff] }
  0x3d   :  { %v579_v48 = vsel %vm1865_vm12, %v575_v17, %v2115_v11  ;;  %v532_v63 = vrot.slane %v156_v50, 6  ;;  %v583_v55 = vrot.slane %v581_v39, 5  ;;  %v1447_v45 = vor.u32 %v1612_v49, %v1444_v53  ;;  %v1631_v50 = vld [vmem:[%s2484_s1 + $0x28] sm:$0xff] }
  0x3e   :  { %624 = vrot.lane.b32.xlu2 %v571_v34, %s1672_s29  ;;  %v168_v34 = vrot.slane %v166_v23, 5  ;;  %v584_v61 = vrot.slane %v238_v52, 6  ;;  %v1428_v6 = vrot.slane %v2154_v16, 10  ;;  %v243_v2 = vshrl.u32 %v2078_v51, 16 }
  0x3f   :  { %610 = vrot.lane.b32.xlu1 %v519_v32, %s1672_s29  ;;  %v153_v32 = vor.u32 %v152_v27, %v149_v25  ;;  %v246_v3 = vshll.u32 %v2078_v51, 16  ;;  %v2188_v38 = vrot.slane %v252_v44, 5  ;;  %v258_v52 = vrot.slane %v256_v47, 4 }
  0x40   :  { %v169_v21 = vsel %vm1779_vm9, %v164_v33, %v168_v34  ;;  %v381_v40 = vrot.slane %v2012_v57, 5  ;;  %v585_v17 = vor.u32 %v584_v61, %v583_v55  ;;  %957 = vmatpush.bf16.msra.mxu0 %v1631_v50  ;;  %1654 = vmatpush.bf16.msra.mxu2 %v1631_v50  ;;  %v245_v46 = vrot.slane %v243_v2, 4  ;;  %v2207_v57 = vld [vmem:[%s2483_s0 + $0x38] sm:$0xf] }
  0x41   :  { %v154_v42 = vrot.slane %v153_v32, 4  ;;  %v248_v22 = vrot.slane %v246_v3, 5  ;;  %v262_v25 = vshll.u32 %v2124_v20, 16  ;;  %v703_v27 = vrot.slane %v2207_v57, 6  ;;  %v1629_v34 = vld [vmem:[%s2484_s1 + $0x18] sm:$0xff] }
  0x42   :  { %v384_v1 = vrot.slane %v2048_v8, 5  ;;  %v587_v5 = vrot.slane %v243_v2, 5  ;;  %v588_v33 = vrot.slane %v246_v3, 6  ;;  %v539_v53 = vrot.slane %v166_v23, 6 }
  0x43   :  { %424 = vrot.lane.b32.xlu0 %v378_v26, %s1670_s15  ;;  %v528_v26 = vrot.slane %v150_v9, 6  ;;  %v159_v9 = vsel %vm1779_vm9, %v154_v42, %v2107_v59  ;;  %v259_v59 = vor.u32 %v258_v52, %v2188_v38  ;;  %v264_v14 = vrot.slane %v262_v25, 5 }
  0x44   :  { %958 = vmatpush.bf16.msra.mxu0 %v1630_v36  ;;  %1655 = vmatpush.bf16.msra.mxu2 %v1630_v36  ;;  %v589_v42 = vor.u32 %v588_v33, %v587_v5  ;;  %v409_v55 = vrot.slane %v2092_v7, 5  ;;  %v599_v5 = vrot.slane %v262_v25, 6  ;;  %v1460_v33 = vld [vmem:[#allocation2 + $0x38] sm:$0xf0]  ;;  %vm314_vm14 = vcmask 519424  }
  0x45   :  { %v529_v54 = vor.u32 %v528_v26, %v527_v37  ;;  %v536_v37 = vshrl.u32 %v2048_v8, 16  ;;  %vm462_vm15 = vcmask 781824   ;;  %v391_v24 = vrot.slane %v2207_v57, 5 }
  0x46   :  { %422 = vrot.lane.b32.xlu2 %v375_v60, %s1670_s15  ;;  %v403_v60 = vsel %vm1749_vm8, %v1422_v41, %v402_v15  ;;  %v580_v15 = vrot.slane %v2115_v11, 4  ;;  %v383_v11 = vrot.slane %v381_v40, 4  ;;  %v591_v41 = vrot.slane %v256_v47, 5  ;;  %v1628_v47 = vld [vmem:[%s2484_s1 + $0x10] sm:$0xff] }
  0x47   :  { %292 = vrot.lane.b32.xlu1 %v241_v58, %s1671_s18  ;;  %v2168_v58 = vld [vmem:[%s2483_s0 + $0x34] sm:$0xf]  ;;  %v530_v10 = vrot.slane %v529_v54, 4  ;;  %v538_v49 = vrot.slane %v536_v37, 5  ;;  %v1614_v54 = vld [vmem:[#allocation2 + $0x24] sm:$0xf] }
  0x48   :  { %v700_v0 = vrot.slane %v2168_v58, 6  ;;  %64 = vst.msk [vmem:[#allocation2 + $0x48] sm:$0xf] %vm54_vm0, %v2168_v58  ;;  %v586_v19 = vsel %vm1865_vm12, %v580_v15, %v585_v17  ;;  %v385_v32 = vsel %vm1749_vm8, %v383_v11, %v384_v1  ;;  %959 = vmatpush.bf16.msra.mxu0 %v1629_v34  ;;  %1656 = vmatpush.bf16.msra.mxu2 %v1629_v34  ;;  %v590_v23 = vrot.slane %v589_v42, 4  ;;  %v1626_v15 = vld [vmem:[%s2484_s1] sm:$0xff] }
  0x49   :  { %1537 = vmatmul.msk.bf16.gmra.mxu1 %vm930_vm13, %v1447_v45  ;;  %v171_v45 = vshrl.u32 %v2154_v16, 16  ;;  %v540_v2 = vor.u32 %v539_v53, %v538_v49  ;;  %v411_v3 = vrot.slane %v409_v55, 4  ;;  %v1423_v11 = vrot.slane %v2078_v51, 9  ;;  %v1616_v51 = vld [vmem:[#allocation2 + $0x34] sm:$0xf] }
  0x4a   :  { %v701_v18 = vsel %vm1732_vm5, %v1428_v6, %v700_v0  ;;  %v702_v30 = vrot.slane %v700_v0, 4  ;;  %v1627_v0 = vld [vmem:[%s2484_s1 + $0x8] sm:$0xff]  ;;  %v596_v1 = vshrl.u32 %v2124_v20, 16  ;;  %v1463_v34 = vor.u32 %v1616_v51, %v1460_v33 }
  0x4b   :  { %290 = vrot.lane.b32.xlu0 %v231_v13, %s1671_s18  ;;  %v2198_v13 = vor.u32 %v532_v63, %v531_v43  ;;  %750 = vst.msk [vmem:[#allocation2 + $0x44] sm:$0xf] %vm54_vm0, %v701_v18  ;;  %v592_v43 = vrot.slane %v252_v44, 6  ;;  %v1452_v63 = vld [vmem:[#allocation2 + $0x28] sm:$0xf0]  ;;  %v173_v52 = vrot.slane %v171_v45, 4 }
  0x4c   :  { %v704_v29 = vsel %vm1732_vm5, %v702_v30, %v703_v27  ;;  %960 = vmatpush.bf16.msra.mxu0 %v1628_v47  ;;  %v1455_v8 = vor.u32 %v1614_v54, %v1452_v63  ;;  %1657 = vmatpush.bf16.msra.mxu2 %v1628_v47  ;;  %v388_v37 = vrot.slane %v2168_v58, 5  ;;  %v1420_v53 = vrot.slane %v2154_v16, 9 }
  0x4d   :  { %v534_v28 = vsel %vm1865_vm12, %v530_v10, %v2198_v13  ;;  %751 = vst.msk [vmem:[#allocation2 + $0x4c] sm:$0xf] %vm54_vm0, %v704_v29  ;;  %v2259_v61 = vor.u32 %v592_v43, %v591_v41  ;;  %v535_v7 = vrot.slane %v2198_v13, 4  ;;  %v190_v10 = vshll.u32 %v2207_v57, 16 }
  0x4e   :  { %612 = vrot.lane.b32.xlu2 %v526_v31, %s1672_s29  ;;  %v260_v31 = vrot.slane %v259_v59, 4  ;;  %v542_v59 = vrot.slane %v171_v45, 5  ;;  %v390_v25 = vrot.slane %v388_v37, 4  ;;  %vm650_vm0 = vcmask 1044224  }
  0x4f   :  { %626 = vrot.lane.b32.xlu1 %v579_v48, %s1672_s29  ;;  %v249_v48 = vor.u32 %v248_v22, %v245_v46  ;;  %v541_v13 = vsel %vm1865_vm12, %v535_v7, %v540_v2  ;;  %v192_v22 = vrot.slane %v190_v10, 5  ;;  %v595_v42 = vrot.slane %v2259_v61, 4 }
  0x50   :  { %v265_v39 = vsel %vm1779_vm9, %v260_v31, %v264_v14  ;;  %961 = vmatpush.bf16.msra.mxu0 %v1627_v0  ;;  %1658 = vmatpush.bf16.msra.mxu2 %v1627_v0  ;;  %v410_v14 = vsel %vm1749_vm8, %v1423_v11, %v409_v55  ;;  %v551_v47 = vshrl.u32 %v2207_v57, 16  ;;  %v389_v63 = vsel %vm1749_vm8, %v1420_v53, %v388_v37 }
  0x51   :  { %v250_v26 = vrot.slane %v249_v48, 4  ;;  %v554_v45 = vrot.slane %v190_v10, 6  ;;  %vm1245_vm3 = vcmask 1041409   ;;  %vm1248_vm4 = vcmask 1042434  }
  0x52   :  { %v553_v55 = vrot.slane %v551_v47, 5  ;;  %vm1251_vm5 = vcmask 1043459   ;;  %vm1254_vm6 = vcmask 1044484   ;;  %vm1257_vm7 = vcmask 1045509  }
  0x53   :  { %440 = vrot.lane.b32.xlu0 %v406_v35, %s1670_s15  ;;  %v1419_v35 = vrot.slane %v2007_v56, 9  ;;  %v184_v56 = vshrl.u32 %v2168_v58, 16  ;;  %v255_v44 = vsel %vm1779_vm9, %v250_v26, %v2188_v38  ;;  %v412_v38 = vrot.slane %v2124_v20, 5 }
  0x54   :  { %962 = vmatpush.bf16.msra.mxu0 %v1626_v15  ;;  %1659 = vmatpush.bf16.msra.mxu2 %v1626_v15 }
  0x55   :  { %v382_v62 = vsel %vm1749_vm8, %v1419_v35, %v381_v40  ;;  %v186_v6 = vrot.slane %v184_v56, 4  ;;  %v413_v17 = vsel %vm1749_vm8, %v411_v3, %v412_v38  ;;  %v546_v48 = vrot.slane %v184_v56, 5 }
  0x56   :  { %438 = vrot.lane.b32.xlu2 %v403_v60, %s1670_s15  ;;  %v174_v60 = vshll.u32 %v2154_v16, 16 }
  0x57   :  { %280 = vrot.lane.b32.xlu1 %v169_v21, %s1671_s18  ;;  %v180_v21 = vshll.u32 %v2168_v58, 16 }
  0x58   :  { %v176_v18 = vrot.slane %v174_v60, 5  ;;  %v543_v27 = vrot.slane %v174_v60, 6  ;;  %v1618_v60 = vld [vmem:[#allocation2 + $0x44] sm:$0xf] }
  0x59   :  { %v182_v50 = vrot.slane %v180_v21, 5  ;;  %1538 = vmatmul.msk.bf16.gmra.mxu1 %vm930_vm13, %v1455_v8  ;;  %v547_v31 = vrot.slane %v180_v21, 6  ;;  %v1468_v8 = vld [vmem:[#allocation2 + $0x48] sm:$0xf0] }
  0x5a   :  { %v177_v30 = vor.u32 %v176_v18, %v173_v52  ;;  %v544_v36 = vor.u32 %v543_v27, %v542_v59  ;;  %v1471_v16 = vor.u32 %v1618_v60, %v1468_v8  ;;  %v1620_v18 = vld [vmem:[#allocation2 + $0x54] sm:$0xf] }
  0x5b   :  { %278 = vrot.lane.b32.xlu0 %v159_v9, %s1671_s18  ;;  %v594_v9 = vsel %vm1865_vm12, %v590_v23, %v2259_v61  ;;  %v187_v40 = vor.u32 %v186_v6, %v182_v50 }
  0x5c   :  { %v545_v26 = vrot.slane %v544_v36, 4  ;;  %v1622_v36 = vld [vmem:[#allocation2 + $0x64] sm:$0xf] }
  0x5d   :  { %v188_v46 = vrot.slane %v187_v40, 4 }
  0x5e   :  { %628 = vrot.lane.b32.xlu2 %v586_v19, %s1672_s29  ;;  %v178_v19 = vrot.slane %v177_v30, 4 }
  0x5f   :  { %614 = vrot.lane.b32.xlu1 %v534_v28, %s1672_s29  ;;  %v193_v29 = vsel %vm1779_vm9, %v188_v46, %v192_v22 }
  0x60   :  { %v183_v35 = vsel %vm1779_vm9, %v178_v19, %v182_v50  ;;  %v555_v50 = vor.u32 %v554_v45, %v553_v55  ;;  %vm1263_vm9 = vcmask 1047559  }
  0x63   :  { %428 = vrot.lane.b32.xlu0 %v385_v32, %s1670_s15  ;;  %v598_v32 = vrot.slane %v596_v1, 5 }
  0x65   :  { %v600_v43 = vor.u32 %v599_v5, %v598_v32 }
  0x66   :  { %426 = vrot.lane.b32.xlu2 %v382_v62, %s1670_s15  ;;  %v392_v62 = vsel %vm1749_vm8, %v390_v25, %v391_v24  ;;  %vm1260_vm8 = vcmask 1046534  }
  0x67   :  { %296 = vrot.lane.b32.xlu1 %v265_v39, %s1671_s18  ;;  %v548_v39 = vor.u32 %v547_v31, %v546_v48  ;;  %v601_v56 = vsel %vm1865_vm12, %v595_v42, %v600_v43  ;;  %v1484_v48 = vld [vmem:[#allocation2 + $0x68] sm:$0xf0] }
  0x69   :  { %1539 = vmatmul.msk.bf16.gmra.mxu1 %vm930_vm13, %v1463_v34  ;;  %v549_v58 = vsel %vm1865_vm12, %v545_v26, %v548_v39  ;;  %v550_v61 = vrot.slane %v548_v39, 4 }
  0x6b   :  { %294 = vrot.lane.b32.xlu0 %v255_v44, %s1671_s18  ;;  %v556_v6 = vsel %vm1865_vm12, %v550_v61, %v555_v50 }
  0x6e   :  { %616 = vrot.lane.b32.xlu2 %v541_v13, %s1672_s29 }
  0x6f   :  { %630 = vrot.lane.b32.xlu1 %v594_v9, %s1672_s29  ;;  %v1479_v9 = vor.u32 %v1620_v18, %v1476_v4 }
  0x70   :  { %v603_v28 = vpop.permute.xlu2 %602 }
  0x73   :  { %444 = vrot.lane.b32.xlu0 %v413_v17, %s1670_s15 }
  0x76   :  { %442 = vrot.lane.b32.xlu2 %v410_v14, %s1670_s15  ;;  %v1487_v14 = vor.u32 %v1622_v36, %v1484_v48 }
  0x77   :  { %284 = vrot.lane.b32.xlu1 %v193_v29, %s1671_s18 }
  0x78   :  { %v605_v20 = vpop.permute.xlu2 %604  ;;  %1542 = vmatmul.msk.bf16.vlgmr.msra.gmra.mxu3 %vm930_vm13, %v1487_v14 }
  0x79   :  { %v415_v41 = vpop.permute.xlu1 %414  ;;  %1540 = vmatmul.msk.bf16.gmra.mxu1 %vm930_vm13, %v1471_v16 }
  0x7b   :  { %282 = vrot.lane.b32.xlu0 %v183_v35, %s1671_s18 }
  0x7d   :  { %v267_v21 = vpop.permute.xlu0 %266 }
  0x7e   :  { %315 = vst.msk [vmem:[#allocation2] sm:$0xf] %vm314_vm14, %v267_v21  ;;  %632 = vrot.lane.b32.xlu2 %v601_v56, %s1672_s29  ;;  %v1624_v56 = vld [vmem:[#allocation2 + $0x74] sm:$0xf] }
  0x7f   :  { %463 = vst.msk [vmem:[#allocation2] sm:$0xf] %vm462_vm15, %v415_v41  ;;  %618 = vrot.lane.b32.xlu1 %v549_v58, %s1672_s29 }
  0x80   :  { %651 = vst.msk [vmem:[#allocation2] sm:$0xf] %vm650_vm0, %v603_v28  ;;  %v419_v44 = vpop.permute.xlu2 %418 }
  0x81   :  { %v417_v49 = vpop.permute.xlu1 %416 }
  0x83   :  { %432 = vrot.lane.b32.xlu0 %v392_v62, %s1670_s15  ;;  %v1492_v62 = vld [vmem:[#allocation2 + $0x78] sm:$0xf0] }
  0x84   :  { %v1495_v53 = vor.u32 %v1624_v56, %v1492_v62 }
  0x85   :  { %v269_v54 = vpop.permute.xlu0 %268 }
  0x86   :  { %316 = vst.msk [vmem:[#allocation2 + $0x8] sm:$0xf] %vm314_vm14, %v269_v54  ;;  %430 = vrot.lane.b32.xlu2 %v389_v63, %s1670_s15 }
  0x87   :  { %464 = vst.msk [vmem:[#allocation2 + $0x8] sm:$0xf] %vm462_vm15, %v417_v49  ;;  %v1434_v0 = vld [vmem:[#allocation2] sm:$0xf] }
  0x88   :  { %652 = vst.msk [vmem:[#allocation2 + $0x8] sm:$0xf] %vm650_vm0, %v605_v20  ;;  %v609_v12 = vpop.permute.xlu2 %608  ;;  %1543 = vmatmul.msk.bf16.gmra.mxu3 %vm930_vm13, %v1495_v53 }
  0x89   :  { %v273_v23 = vpop.permute.xlu1 %272  ;;  %1541 = vmatmul.msk.bf16.gmra.mxu1 %vm930_vm13, %v1479_v9 }
  0x8a   :  { %318 = vst.msk [vmem:[#allocation2 + $0x18] sm:$0xf] %vm314_vm14, %v273_v23 }
  0x8d   :  { %v271_v57 = vpop.permute.xlu0 %270 }
  0x8e   :  { %317 = vst.msk [vmem:[#allocation2 + $0x10] sm:$0xf] %vm314_vm14, %v271_v57  ;;  %620 = vrot.lane.b32.xlu2 %v556_v6, %s1672_s29 }
  0x8f   :  { %465 = vst.msk [vmem:[#allocation2 + $0x10] sm:$0xf] %vm462_vm15, %v419_v44  ;;  %v1611_v7 = vld [vmem:[#allocation2 + $0x4] sm:$0xf0] }
  0x90   :  { %v1435_v2 = vor.u32 %v1611_v7, %v1434_v0  ;;  %v435_v38 = vpop.permute.xlu2 %434 }
  0x91   :  { %v607_v3 = vpop.permute.xlu1 %606 }
  0x92   :  { %963 = vmatmul.bf16.vlgmr.msra.gmra.mxu0 %v1435_v2  ;;  %653 = vst.msk [vmem:[#allocation2 + $0x10] sm:$0xf] %vm650_vm0, %v607_v3 }
  0x95   :  { %v421_v52 = vpop.permute.xlu0 %420 }
  0x96   :  { %466 = vst.msk [vmem:[#allocation2 + $0x18] sm:$0xf] %vm462_vm15, %v421_v52 }
  0x97   :  { %654 = vst.msk [vmem:[#allocation2 + $0x18] sm:$0xf] %vm650_vm0, %v609_v12 }
  0x98   :  { %v625_v10 = vpop.permute.xlu2 %624 }
  0x99   :  { %v289_v40 = vpop.permute.xlu1 %288  ;;  %v1442_v13 = vld [vmem:[#allocation2 + $0x10] sm:$0xf] }
  0x9a   :  { %326 = vst.msk [vmem:[#allocation2 + $0x58] sm:$0xf] %vm314_vm14, %v289_v40  ;;  %v1069_v40 = vlaneseq }
  0x9d   :  { %v287_v15 = vpop.permute.xlu0 %286 }
  0x9e   :  { %325 = vst.msk [vmem:[#allocation2 + $0x50] sm:$0xf] %vm314_vm14, %v287_v15  ;;  %v1613_v17 = vld [vmem:[#allocation2 + $0x14] sm:$0xf0]  ;;  %v1070_v15 = vshrl.u32 %v1069_v40, 7 }
  0x9f   :  { %473 = vst.msk [vmem:[#allocation2 + $0x50] sm:$0xf] %vm462_vm15, %v435_v38  ;;  %v1443_v30 = vor.u32 %v1613_v17, %v1442_v13  ;;  %v2376_v13 = vld [vmem:[%s2485_s2] ss:$0 sm:$0xff] }
  0xa0   :  { %v423_v22 = vpop.permute.xlu2 %422 }
  0xa1   :  { %v623_v46 = vpop.permute.xlu1 %622 }
  0xa2   :  { %968 = vmatmul.bf16.gmra.mxu0 %v1443_v30  ;;  %661 = vst.msk [vmem:[#allocation2 + $0x50] sm:$0xf] %vm650_vm0, %v623_v46  ;;  %v1071_v30 = vadd.s32 8, %v1070_v15 }
  0xa5   :  { %v437_v59 = vpop.permute.xlu0 %436 }
  0xa6   :  { %474 = vst.msk [vmem:[#allocation2 + $0x58] sm:$0xf] %vm462_vm15, %v437_v59 }
  0xa7   :  { %662 = vst.msk [vmem:[#allocation2 + $0x58] sm:$0xf] %vm650_vm0, %v625_v10 }
  0xa8   :  { %v613_v11 = vpop.permute.xlu2 %612 }
  0xa9   :  { %v277_v27 = vpop.permute.xlu1 %276  ;;  %v1474_v1 = vld [vmem:[#allocation2 + $0x50] sm:$0xf] }
  0xaa   :  { %320 = vst.msk [vmem:[#allocation2 + $0x28] sm:$0xf] %vm314_vm14, %v277_v27 }
  0xad   :  { %v275_v28 = vpop.permute.xlu0 %274 }
  0xae   :  { %319 = vst.msk [vmem:[#allocation2 + $0x20] sm:$0xf] %vm314_vm14, %v275_v28  ;;  %v1621_v19 = vld [vmem:[#allocation2 + $0x54] sm:$0xf0]  ;;  %v1673_v28 = vmov 0.0  }
  0xaf   :  { %467 = vst.msk [vmem:[#allocation2 + $0x20] sm:$0xf] %vm462_vm15, %v423_v22  ;;  %v1475_v29 = vor.u32 %v1621_v19, %v1474_v1  ;;  %v1667_v22 = vld [vmem:[%s2486_s3] ss:$0 sm:$0xff] }
  0xb0   :  { %v439_v32 = vpop.permute.xlu2 %438  ;;  %vm1075_vm1 = vcmp.le.s32.totalorder %v1071_v30, %v1667_v22  ;;  %vm1074_vm2 = vcmp.le.s32.totalorder %v1070_v15, %v1667_v22 }
  0xb1   :  { %988 = vmatmul.bf16.vlgmr.msra.gmra.mxu2 %v1475_v29  ;;  %v611_v31 = vpop.permute.xlu1 %610  ;;  %v2383_v19 = vsel %vm1075_vm1, 1.0, %v1673_v28  ;;  %v2385_v48 = vsel %vm1074_vm2, 1.0, %v1673_v28 }
  0xb2   :  { %655 = vst.msk [vmem:[#allocation2 + $0x20] sm:$0xf] %vm650_vm0, %v611_v31 }
  0xb5   :  { %v425_v5 = vpop.permute.xlu0 %424 }
  0xb6   :  { %468 = vst.msk [vmem:[#allocation2 + $0x28] sm:$0xf] %vm462_vm15, %v425_v5  ;;  %v1013_v4 = vpop.f32.mrf.mxu1 }
  0xb7   :  { %656 = vst.msk [vmem:[#allocation2 + $0x28] sm:$0xf] %vm650_vm0, %v613_v11 }
  0xb8   :  { %v629_v33 = vpop.permute.xlu2 %628 }
  0xb9   :  { %v293_v51 = vpop.permute.xlu1 %292  ;;  %v1450_v34 = vld [vmem:[#allocation2 + $0x20] sm:$0xf] }
  0xba   :  { %328 = vst.msk [vmem:[#allocation2 + $0x68] sm:$0xf] %vm314_vm14, %v293_v51 }
  0xbd   :  { %v291_v35 = vpop.permute.xlu0 %290 }
  0xbe   :  { %327 = vst.msk [vmem:[#allocation2 + $0x60] sm:$0xf] %vm314_vm14, %v291_v35  ;;  %v1615_v37 = vld [vmem:[#allocation2 + $0x24] sm:$0xf0]  ;;  %v1015_v9 = vpop.f32.mrf.mxu1 }
  0xbf   :  { %475 = vst.msk [vmem:[#allocation2 + $0x60] sm:$0xf] %vm462_vm15, %v439_v32  ;;  %v1451_v26 = vor.u32 %v1615_v37, %v1450_v34 }
  0xc0   :  { %v427_v41 = vpop.permute.xlu2 %426 }
  0xc1   :  { %973 = vmatmul.bf16.gmra.mxu0 %v1451_v26  ;;  %v627_v39 = vpop.permute.xlu1 %626 }
  0xc2   :  { %663 = vst.msk [vmem:[#allocation2 + $0x60] sm:$0xf] %vm650_vm0, %v627_v39 }
  0xc5   :  { %v441_v42 = vpop.permute.xlu0 %440 }
  0xc6   :  { %476 = vst.msk [vmem:[#allocation2 + $0x68] sm:$0xf] %vm462_vm15, %v441_v42  ;;  %v1018_v46 = vpop.f32.mrf.mxu1 }
  0xc7   :  { %664 = vst.msk [vmem:[#allocation2 + $0x68] sm:$0xf] %vm650_vm0, %v629_v33 }
  0xc8   :  { %v617_v25 = vpop.permute.xlu2 %616 }
  0xc9   :  { %v281_v43 = vpop.permute.xlu1 %280  ;;  %v1482_v20 = vld [vmem:[#allocation2 + $0x60] sm:$0xf] }
  0xca   :  { %322 = vst.msk [vmem:[#allocation2 + $0x38] sm:$0xf] %vm314_vm14, %v281_v43 }
  0xcd   :  { %v279_v24 = vpop.permute.xlu0 %278 }
  0xce   :  { %321 = vst.msk [vmem:[#allocation2 + $0x30] sm:$0xf] %vm314_vm14, %v279_v24  ;;  %v1623_v58 = vld [vmem:[#allocation2 + $0x64] sm:$0xf0]  ;;  %v1020_v14 = vpop.f32.mrf.mxu1 }
  0xcf   :  { %469 = vst.msk [vmem:[#allocation2 + $0x30] sm:$0xf] %vm462_vm15, %v427_v41  ;;  %v1483_v21 = vor.u32 %v1623_v58, %v1482_v20 }
  0xd0   :  { %v443_v44 = vpop.permute.xlu2 %442 }
  0xd1   :  { %993 = vmatmul.bf16.gmra.mxu2 %v1483_v21  ;;  %v615_v49 = vpop.permute.xlu1 %614 }
  0xd2   :  { %657 = vst.msk [vmem:[#allocation2 + $0x30] sm:$0xf] %vm650_vm0, %v615_v49 }
  0xd5   :  { %v429_v47 = vpop.permute.xlu0 %428 }
  0xd6   :  { %470 = vst.msk [vmem:[#allocation2 + $0x38] sm:$0xf] %vm462_vm15, %v429_v47  ;;  %v1023_v39 = vpop.f32.mrf.mxu1 }
  0xd7   :  { %658 = vst.msk [vmem:[#allocation2 + $0x38] sm:$0xf] %vm650_vm0, %v617_v25 }
  0xd8   :  { %v633_v8 = vpop.permute.xlu2 %632 }
  0xd9   :  { %v297_v54 = vpop.permute.xlu1 %296  ;;  %v1458_v63 = vld [vmem:[#allocation2 + $0x30] sm:$0xf] }
  0xda   :  { %330 = vst.msk [vmem:[#allocation2 + $0x78] sm:$0xf] %vm314_vm14, %v297_v54 }
  0xdd   :  { %v295_v55 = vpop.permute.xlu0 %294 }
  0xde   :  { %329 = vst.msk [vmem:[#allocation2 + $0x70] sm:$0xf] %vm314_vm14, %v295_v55  ;;  %v1617_v45 = vld [vmem:[#allocation2 + $0x34] sm:$0xf0]  ;;  %v1025_v49 = vpop.f32.mrf.mxu1 }
  0xdf   :  { %477 = vst.msk [vmem:[#allocation2 + $0x70] sm:$0xf] %vm462_vm15, %v443_v44  ;;  %v1459_v60 = vor.u32 %v1617_v45, %v1458_v63 }
  0xe0   :  { %v431_v50 = vpop.permute.xlu2 %430 }
  0xe1   :  { %978 = vmatmul.bf16.gmra.mxu0 %v1459_v60  ;;  %v631_v16 = vpop.permute.xlu1 %630 }
  0xe2   :  { %665 = vst.msk [vmem:[#allocation2 + $0x70] sm:$0xf] %vm650_vm0, %v631_v16 }
  0xe5   :  { %v445_v23 = vpop.permute.xlu0 %444 }
  0xe6   :  { %478 = vst.msk [vmem:[#allocation2 + $0x78] sm:$0xf] %vm462_vm15, %v445_v23  ;;  %v1028_v60 = vpop.f32.mrf.mxu1 }
  0xe7   :  { %666 = vst.msk [vmem:[#allocation2 + $0x78] sm:$0xf] %vm650_vm0, %v633_v8 }
  0xe8   :  { %v621_v2 = vpop.permute.xlu2 %620 }
  0xe9   :  { %v285_v61 = vpop.permute.xlu1 %284  ;;  %v1490_v12 = vld [vmem:[#allocation2 + $0x70] sm:$0xf] }
  0xea   :  { %324 = vst.msk [vmem:[#allocation2 + $0x48] sm:$0xf] %vm314_vm14, %v285_v61 }
  0xed   :  { %v283_v57 = vpop.permute.xlu0 %282 }
  0xee   :  { %323 = vst.msk [vmem:[#allocation2 + $0x40] sm:$0xf] %vm314_vm14, %v283_v57  ;;  %v1625_v6 = vld [vmem:[#allocation2 + $0x74] sm:$0xf0]  ;;  %v1030_v57 = vpop.f32.mrf.mxu1 }
  0xef   :  { %471 = vst.msk [vmem:[#allocation2 + $0x40] sm:$0xf] %vm462_vm15, %v431_v50  ;;  %v1491_v0 = vor.u32 %v1625_v6, %v1490_v12 }
  0xf1   :  { %998 = vmatmul.bf16.gmra.mxu2 %v1491_v0  ;;  %v619_v7 = vpop.permute.xlu1 %618 }
  0xf2   :  { %659 = vst.msk [vmem:[#allocation2 + $0x40] sm:$0xf] %vm650_vm0, %v619_v7 }
  0xf5   :  { %v433_v3 = vpop.permute.xlu0 %432 }
  0xf6   :  { %472 = vst.msk [vmem:[#allocation2 + $0x48] sm:$0xf] %vm462_vm15, %v433_v3  ;;  %v2395_v7 = vpop.f32.mrf.mxu1 }
  0xf7   :  { %660 = vst.msk [vmem:[#allocation2 + $0x48] sm:$0xf] %vm650_vm0, %v621_v2 }
  0xf9   :  { %v1466_v38 = vld [vmem:[#allocation2 + $0x40] sm:$0xf] }
  0xfe   :  { %v1619_v52 = vld [vmem:[#allocation2 + $0x44] sm:$0xf0] }
  0xff   :  { %v1467_v18 = vor.u32 %v1619_v52, %v1466_v38  ;;  %v2397_v38 = vpop.f32.mrf.mxu1 }
 0x101   :  { %983 = vmatmul.bf16.gmra.mxu0 %v1467_v18  ;;  %v1043_v18 = vpop.f32.mrf.mxu3 }
 0x107   :  { %v1038_v40 = vpop.f32.mrf.mxu1 }
 0x10f   :  { %v964_v10 = vpop.f32.mrf.mxu0 }
 0x110   :  { %v965_v17 = vadd.f32 %v2376_v13, %v964_v10 }
 0x112   :  { %v1014_v27 = vadd.f32 %v1013_v4, %v965_v17  ;;  %v1643_v4 = vld [vmem:[%s2488_s4 + $0x38] sm:$0xff]  ;;  %v1045_v17 = vpop.f32.mrf.mxu3 }
 0x113   :  { %1315 = vmatpush.bf16.msrb.mxu2 %v1643_v4 }
 0x114   :  { %v1053_v29 = vmax.f32 %v1014_v27, 0.0  ;;  %v1642_v27 = vld [vmem:[%s2488_s4 + $0x30] sm:$0xff] }
 0x116   :  { %v1080_v5 = vmul.f32 %v2385_v48, %v1053_v29 }
 0x117   :  { %v966_v59 = vpop.f32.mrf.mxu0  ;;  %1316 = vmatpush.bf16.msrb.mxu2 %v1642_v27 }
 0x118   :  { %v967_v11 = vadd.f32 %v2376_v13, %v966_v59 }
 0x11a   :  { %v1016_v1 = vadd.f32 %v1015_v9, %v967_v11 }
 0x11c   :  { %v1054_v36 = vmax.f32 %v1016_v1, 0.0 }
 0x11e   :  { %v1081_v31 = vmul.f32 %v2383_v19, %v1054_v36  ;;  %v1040_v36 = vpop.f32.mrf.mxu1 }
 0x11f   :  { %v969_v32 = vpop.f32.mrf.mxu0 }
 0x120   :  { %v1096_v51 = vmax.f32 %v1080_v5, %v1081_v31  ;;  %v970_v33 = vadd.f32 %v2376_v13, %v969_v32 }
 0x122   :  { %v1112_v34 = vrot.slane %v1096_v51, 4  ;;  %v1019_v35 = vadd.f32 %v1018_v46, %v970_v33 }
 0x124   :  { %v1128_v41 = vmax.f32 %v1096_v51, %v1112_v34  ;;  %v1055_v42 = vmax.f32 %v1019_v35, 0.0 }
 0x126   :  { %v1144_v25 = vrot.slane %v1128_v41, 2  ;;  %v1082_v24 = vmul.f32 %v2385_v48, %v1055_v42 }
 0x127   :  { %v971_v37 = vpop.f32.mrf.mxu0 }
 0x128   :  { %v972_v26 = vadd.f32 %v2376_v13, %v971_v37  ;;  %v1160_v56 = vmax.f32 %v1128_v41, %v1144_v25  ;;  %v1048_v37 = vpop.f32.mrf.mxu3 }
 0x12a   :  { %v1021_v43 = vadd.f32 %v1020_v14, %v972_v26  ;;  %v1176_v47 = vrot.slane %v1160_v56, 1  ;;  %v1641_v14 = vld [vmem:[%s2488_s4 + $0x28] sm:$0xff] }
 0x12b   :  { %1317 = vmatpush.bf16.msrb.mxu2 %v1641_v14 }
 0x12c   :  { %v1056_v20 = vmax.f32 %v1021_v43, 0.0  ;;  %v1192_v63 = vmax.f32 %v1160_v56, %v1176_v47 }
 0x12e   :  { %v1083_v58 = vmul.f32 %v2383_v19, %v1056_v20  ;;  %v1200_v8 = vpack.c.bf16 %v1192_v63, %v1192_v63  ;;  %v1640_v20 = vld [vmem:[%s2488_s4 + $0x20] sm:$0xff] }
 0x12f   :  { %1318 = vmatpush.bf16.msrb.mxu2 %v1640_v20 }
 0x130   :  { %v1097_v21 = vmax.f32 %v1082_v24, %v1083_v58  ;;  %v1236_v61 = vunpack.c.l.b16 %v1200_v8 }
 0x132   :  { %v1113_v62 = vrot.slane %v1097_v21, 4 }
 0x134   :  { %v1129_v53 = vmax.f32 %v1097_v21, %v1113_v62  ;;  %v989_v0 = vpop.f32.mrf.mxu2 }
 0x135   :  { %v990_v32 = vadd.f32 %v2376_v13, %v989_v0 }
 0x136   :  { %v1145_v44 = vrot.slane %v1129_v53, 2 }
 0x138   :  { %v1161_v54 = vmax.f32 %v1129_v53, %v1145_v44  ;;  %v1639_v44 = vld [vmem:[%s2488_s4 + $0x18] sm:$0xff] }
 0x139   :  { %1319 = vmatpush.bf16.msrb.mxu2 %v1639_v44 }
 0x13a   :  { %v1177_v55 = vrot.slane %v1161_v54, 1 }
 0x13c   :  { %v1193_v45 = vmax.f32 %v1161_v54, %v1177_v55  ;;  %v991_v3 = vpop.f32.mrf.mxu2 }
 0x13d   :  { %v992_v1 = vadd.f32 %v2376_v13, %v991_v3 }
 0x13e   :  { %v1201_v16 = vpack.c.bf16 %v1193_v45, %v1193_v45  ;;  %v974_v6 = vpop.f32.mrf.mxu0 }
 0x13f   :  { %v975_v46 = vadd.f32 %v2376_v13, %v974_v6  ;;  %v1041_v34 = vadd.f32 %v1040_v36, %v992_v1 }
 0x140   :  { %v1237_v23 = vunpack.c.l.b16 %v1201_v16 }
 0x141   :  { %v1024_v29 = vadd.f32 %v1023_v39, %v975_v46  ;;  %v1039_v39 = vadd.f32 %v1038_v40, %v990_v32  ;;  %v1064_v58 = vmax.f32 %v1041_v34, 0.0  ;;  %v1637_v40 = vld [vmem:[%s2488_s4 + $0x8] sm:$0xff] }
 0x142   :  { %v1244_v50 = vrot.slane %v1237_v23, 7 }
 0x143   :  { %v1057_v26 = vmax.f32 %v1024_v29, 0.0  ;;  %v1063_v53 = vmax.f32 %v1039_v39, 0.0  ;;  %v1091_v55 = vmul.f32 %v2383_v19, %v1064_v58 }
 0x144   :  { %v2393_v12 = vsel %vm1245_vm3, %v1244_v50, %v1236_v61  ;;  %v1050_v61 = vpop.f32.mrf.mxu3  ;;  %v1638_v50 = vld [vmem:[%s2488_s4 + $0x10] sm:$0xff] }
 0x145   :  { %v1084_v56 = vmul.f32 %v2385_v48, %v1057_v26  ;;  %v1090_v16 = vmul.f32 %v2385_v48, %v1063_v53  ;;  %1320 = vmatpush.bf16.msrb.mxu2 %v1638_v50  ;;  %v1651_v26 = vld [vmem:[%s2489_s6 + $0x38] sm:$0xff] }
 0x146   :  { %v976_v2 = vpop.f32.mrf.mxu0  ;;  %1398 = vmatpush.bf16.msrb.mxu3 %v1651_v26  ;;  %v1647_v50 = vld [vmem:[%s2489_s6 + $0x18] sm:$0xff] }
 0x147   :  { %v977_v15 = vadd.f32 %v2376_v13, %v976_v2  ;;  %v1101_v2 = vmax.f32 %v1090_v16, %v1091_v55 }
 0x149   :  { %v1026_v11 = vadd.f32 %v1025_v49, %v977_v15  ;;  %1321 = vmatpush.bf16.msrb.mxu2 %v1637_v40 }
 0x14b   :  { %v1058_v51 = vmax.f32 %v1026_v11, 0.0 }
 0x14d   :  { %v1085_v25 = vmul.f32 %v2383_v19, %v1058_v51 }
 0x14f   :  { %v1098_v54 = vmax.f32 %v1084_v56, %v1085_v25 }
 0x154   :  { %v994_v9 = vpop.f32.mrf.mxu2 }
 0x155   :  { %v995_v33 = vadd.f32 %v2376_v13, %v994_v9 }
 0x157   :  { %v1044_v24 = vadd.f32 %v1043_v18, %v995_v33 }
 0x159   :  { %v1065_v63 = vmax.f32 %v1044_v24, 0.0 }
 0x15b   :  { %v1092_v6 = vmul.f32 %v2385_v48, %v1065_v63 }
 0x15c   :  { %v996_v22 = vpop.f32.mrf.mxu2 }
 0x15d   :  { %v997_v31 = vadd.f32 %v2376_v13, %v996_v22  ;;  %v1636_v22 = vld [vmem:[%s2488_s4] sm:$0xff] }
 0x15e   :  { %v979_v52 = vpop.f32.mrf.mxu0  ;;  %1322 = vmatpush.bf16.msrb.mxu2 %v1636_v22  ;;  %v1645_v22 = vld [vmem:[%s2489_s6 + $0x8] sm:$0xff] }
 0x15f   :  { %v980_v59 = vadd.f32 %v2376_v13, %v979_v52  ;;  %v1046_v41 = vadd.f32 %v1045_v17, %v997_v31 }
 0x161   :  { %v1029_v5 = vadd.f32 %v1028_v60, %v980_v59  ;;  %v1066_v62 = vmax.f32 %v1046_v41, 0.0 }
 0x163   :  { %v1059_v42 = vmax.f32 %v1029_v5, 0.0  ;;  %v1093_v60 = vmul.f32 %v2383_v19, %v1066_v62  ;;  %v1649_v62 = vld [vmem:[%s2489_s6 + $0x28] sm:$0xff] }
 0x165   :  { %v1086_v47 = vmul.f32 %v2385_v48, %v1059_v42  ;;  %v1102_v18 = vmax.f32 %v1092_v6, %v1093_v60 }
 0x166   :  { %v981_v10 = vpop.f32.mrf.mxu0 }
 0x167   :  { %v982_v30 = vadd.f32 %v2376_v13, %v981_v10  ;;  %v1118_v59 = vrot.slane %v1102_v18, 4 }
 0x169   :  { %v1031_v28 = vadd.f32 %v1030_v57, %v982_v30  ;;  %v1114_v57 = vrot.slane %v1098_v54, 4  ;;  %v1117_v30 = vrot.slane %v1101_v2, 4  ;;  %v1134_v32 = vmax.f32 %v1102_v18, %v1118_v59 }
 0x16b   :  { %v1060_v35 = vmax.f32 %v1031_v28, 0.0  ;;  %v1130_v10 = vmax.f32 %v1098_v54, %v1114_v57  ;;  %v1133_v36 = vmax.f32 %v1101_v2, %v1117_v30  ;;  %v1150_v39 = vrot.slane %v1134_v32, 2 }
 0x16d   :  { %v1087_v21 = vmul.f32 %v2383_v19, %v1060_v35  ;;  %v1146_v1 = vrot.slane %v1130_v10, 2  ;;  %v1149_v41 = vrot.slane %v1133_v36, 2 }
 0x16f   :  { %v1099_v45 = vmax.f32 %v1086_v47, %v1087_v21  ;;  %v1162_v33 = vmax.f32 %v1130_v10, %v1146_v1  ;;  %v1166_v21 = vmax.f32 %v1134_v32, %v1150_v39 }
 0x171   :  { %v1115_v3 = vrot.slane %v1099_v45, 4  ;;  %v1182_v63 = vrot.slane %v1166_v21, 1 }
 0x173   :  { %v1131_v46 = vmax.f32 %v1099_v45, %v1115_v3 }
 0x174   :  { %v999_v43 = vpop.f32.mrf.mxu2 }
 0x175   :  { %v1000_v49 = vadd.f32 %v2376_v13, %v999_v43  ;;  %v1147_v31 = vrot.slane %v1131_v46, 2  ;;  %v1650_v43 = vld [vmem:[%s2489_s6 + $0x30] sm:$0xff] }
 0x176   :  { %1399 = vmatpush.bf16.msrb.mxu3 %v1650_v43 }
 0x177   :  { %v1049_v8 = vadd.f32 %v1048_v37, %v1000_v49 }
 0x179   :  { %v1067_v4 = vmax.f32 %v1049_v8, 0.0 }
 0x17a   :  { %1400 = vmatpush.bf16.msrb.mxu3 %v1649_v62 }
 0x17b   :  { %v1094_v27 = vmul.f32 %v2385_v48, %v1067_v4  ;;  %v1646_v4 = vld [vmem:[%s2489_s6 + $0x10] sm:$0xff] }
 0x17c   :  { %v1001_v23 = vpop.f32.mrf.mxu2 }
 0x17d   :  { %v1002_v0 = vadd.f32 %v2376_v13, %v1001_v23  ;;  %v1198_v23 = vmax.f32 %v1166_v21, %v1182_v63 }
 0x17e   :  { %v984_v52 = vpop.f32.mrf.mxu0 }
 0x17f   :  { %v1051_v9 = vadd.f32 %v1050_v61, %v1002_v0  ;;  %v985_v15 = vadd.f32 %v2376_v13, %v984_v52  ;;  %v1206_v52 = vpack.c.bf16 %v1198_v23, %v1198_v23 }
 0x181   :  { %v1068_v17 = vmax.f32 %v1051_v9, 0.0  ;;  %v1034_v28 = vadd.f32 %v2395_v7, %v985_v15  ;;  %v1163_v7 = vmax.f32 %v1131_v46, %v1147_v31  ;;  %v1242_v46 = vunpack.c.l.b16 %v1206_v52 }
 0x183   :  { %v1095_v11 = vmul.f32 %v2383_v19, %v1068_v17  ;;  %v1061_v34 = vmax.f32 %v1034_v28, 0.0  ;;  %v1179_v58 = vrot.slane %v1163_v7, 1 }
 0x185   :  { %v1103_v29 = vmax.f32 %v1094_v27, %v1095_v11  ;;  %v1088_v25 = vmul.f32 %v2385_v48, %v1061_v34  ;;  %v1195_v54 = vmax.f32 %v1163_v7, %v1179_v58  ;;  %v1669_v7 = vld [vmem:[%s2490_s7] ss:$0 sm:$0xff] }
 0x186   :  { %v986_v14 = vpop.f32.mrf.mxu0 }
 0x187   :  { %v1119_v5 = vrot.slane %v1103_v29, 4  ;;  %v987_v51 = vadd.f32 %v2376_v13, %v986_v14  ;;  %v1178_v13 = vrot.slane %v1162_v33, 1  ;;  %v1203_v16 = vpack.c.bf16 %v1195_v54, %v1195_v54 }
 0x189   :  { %v1135_v35 = vmax.f32 %v1103_v29, %v1119_v5  ;;  %v1036_v37 = vadd.f32 %v2397_v38, %v987_v51  ;;  %v1165_v38 = vmax.f32 %v1133_v36, %v1149_v41  ;;  %v1194_v53 = vmax.f32 %v1162_v33, %v1178_v13  ;;  %v1644_v33 = vld [vmem:[%s2489_s6] sm:$0xff] }
 0x18a   :  { %v1239_v3 = vunpack.c.l.b16 %v1203_v16  ;;  %v1259_v36 = vrot.slane %v1242_v46, 2 }
 0x18b   :  { %v1062_v42 = vmax.f32 %v1036_v37, 0.0  ;;  %v1151_v20 = vrot.slane %v1135_v35, 2  ;;  %v1181_v44 = vrot.slane %v1165_v38, 1  ;;  %v1202_v45 = vpack.c.bf16 %v1194_v53, %v1194_v53 }
 0x18c   :  { %v1250_v17 = vrot.slane %v1239_v3, 5 }
 0x18d   :  { %v1089_v24 = vmul.f32 %v2383_v19, %v1062_v42  ;;  %v1167_v49 = vmax.f32 %v1135_v35, %v1151_v20  ;;  %v1648_v19 = vld [vmem:[%s2489_s6 + $0x20] sm:$0xff]  ;;  %v1197_v8 = vmax.f32 %v1165_v38, %v1181_v44  ;;  %v1238_v6 = vunpack.c.l.b16 %v1202_v45 }
 0x18e   :  { %1401 = vmatpush.bf16.msrb.mxu3 %v1648_v19 }
 0x18f   :  { %v1100_v56 = vmax.f32 %v1088_v25, %v1089_v24  ;;  %v1183_v48 = vrot.slane %v1167_v49, 1  ;;  %v1205_v2 = vpack.c.bf16 %v1197_v8, %v1197_v8  ;;  %v1247_v40 = vrot.slane %v1238_v6, 6 }
 0x191   :  { %v1116_v47 = vrot.slane %v1100_v56, 4  ;;  %v1199_v57 = vmax.f32 %v1167_v49, %v1183_v48  ;;  %v1241_v15 = vunpack.c.l.b16 %v1205_v2  ;;  %v1249_v11 = vsel %vm1248_vm4, %v1247_v40, %v2393_v12  ;;  %v1668_v12 = vld [vmem:[%s2487_s5] ss:$0 sm:$0xff] }
 0x192   :  { %1402 = vmatpush.bf16.msrb.mxu3 %v1647_v50  ;;  %v1252_v28 = vsel %vm1251_vm5, %v1250_v17, %v1249_v11 }
 0x193   :  { %v1132_v55 = vmax.f32 %v1100_v56, %v1116_v47  ;;  %v1207_v9 = vpack.c.bf16 %v1199_v57, %v1199_v57  ;;  %v1256_v1 = vrot.slane %v1241_v15, 3 }
 0x195   :  { %v1148_v60 = vrot.slane %v1132_v55, 2  ;;  %v1243_v59 = vunpack.c.l.b16 %v1207_v9 }
 0x196   :  { %1403 = vmatpush.bf16.msrb.mxu3 %v1646_v4 }
 0x197   :  { %v1164_v61 = vmax.f32 %v1132_v55, %v1148_v60  ;;  %v1262_v14 = vrot.slane %v1243_v59, 1 }
 0x199   :  { %v1180_v0 = vrot.slane %v1164_v61, 1 }
 0x19a   :  { %1404 = vmatpush.bf16.msrb.mxu3 %v1645_v22 }
 0x19b   :  { %v1196_v18 = vmax.f32 %v1164_v61, %v1180_v0 }
 0x19d   :  { %v1204_v10 = vpack.c.bf16 %v1196_v18, %v1196_v18 }
 0x19e   :  { %1405 = vmatpush.bf16.msrb.mxu3 %v1644_v33 }
 0x19f   :  { %v1240_v30 = vunpack.c.l.b16 %v1204_v10 }
 0x1a1   :  { %v1253_v27 = vrot.slane %v1240_v30, 4 }
 0x1a3   :  { %v1255_v29 = vsel %vm1254_vm6, %v1253_v27, %v1252_v28 }
 0x1a4   :  { %v1258_v31 = vsel %vm1257_vm7, %v1256_v1, %v1255_v29 }
 0x1a5   :  { %v1261_v32 = vsel %vm1260_vm8, %v1259_v36, %v1258_v31 }
 0x1a6   :  { %v1264_v5 = vsel %vm1263_vm9, %v1262_v14, %v1261_v32 }
 0x1a7   :  { %v1265_v51 = vpack.c.b16 %v1264_v5, %v1264_v5 }
 0x1a9   :  { %1323 = vmatmul.bf16.vlgmr.msrb.gmra.mxu2 %v1265_v51 }
 0x22c   :  { %v1324_v34 = vpop.f32.mrf.mxu2 }
 0x22d   :  { %v1325_v35 = vadd.f32 %v1668_v12, %v1324_v34 }
 0x22f   :  { %v1328_v37 = vmax.f32 %v1325_v35, 0.0 }
 0x231   :  { %v1329_v26 = vpack.c.bf16 %v1328_v37, %v1328_v37 }
 0x233   :  { %1406 = vmatmul.bf16.vlgmr.msrb.gmra.mxu3 %v1329_v26 }
 0x234   :  { %v1326_v41 = vpop.f32.mrf.mxu2 }
 0x2b6   :  { %v1407_v39 = vpop.f32.mrf.mxu3 }
 0x2b7   :  { %v1408_v42 = vadd.f32 %v1669_v7, %v1407_v39 }
 0x2b9   :  { %1411 = vst [vmem:[%s2491_s8] sm:$0xff] %v1408_v42 }
 0x2be   :  { %v1409_v43 = vpop.f32.mrf.mxu3 }

</bundles_post_ra>
